<compile_context>
chip_gen: v6e
topology: v6e:2x2x1
jax: 0.10.0
libtpu: 0.0.40
codegen_flags: <defaults>
</compile_context>

<pallas_src>
import functools
import math

import jax
import jax.numpy as jnp
from jax.experimental import pallas as pl
from jax.experimental.pallas import tpu as pltpu

LN_EPS = 1e-12                      # BERT LayerNorm epsilon
_SQRT_HALF = 1.0 / math.sqrt(2.0)

# Exact erf GELU matches the PyTorch/HF reference. Set True to trade a little
# accuracy for speed: tanh runs on the EUP slot (nearly free next to the MXU),
# while erf lowers to a long f32 polynomial on the VALU.
GELU_TANH_APPROX = False


def _gelu(x):
    if GELU_TANH_APPROX:
        return 0.5 * x * (1.0 + jnp.tanh(0.7978845608028654
                                         * (x + 0.044715 * x * x * x)))
    return 0.5 * x * (1.0 + jax.lax.erf(x * _SQRT_HALF))


# ----------------------------------------------------------------------------
# VMEM budgeting / tiling helpers
# ----------------------------------------------------------------------------
def _round_up(x, m):
    return ((x + m - 1) // m) * m


@functools.lru_cache(maxsize=None)
def _vmem_budget():
    """(tile_working_set_budget, vmem_limit_bytes) derived from the chip."""
    try:
        info = pltpu.get_tpu_info()
        cap = int(getattr(info, "vmem_capacity_bytes", 0))
    except Exception:  # pragma: no cover - defensive, e.g. interpret mode
        cap = 0
    if cap < (16 << 20):
        cap = 64 << 20                      # conservative: v7x per-core VMEM
    tile_budget = int(cap * 0.60)           # leave headroom for Mosaic scratch
    vmem_limit = min(int(cap * 0.85), cap - (4 << 20))
    return tile_budget, vmem_limit


def _compiler_params(dimension_semantics):
    _, vmem_limit = _vmem_budget()
    return pltpu.CompilerParams(dimension_semantics=dimension_semantics,
                                vmem_limit_bytes=vmem_limit)


def _choose_rows(m, target, fixed_bytes, per_row_bytes):
    """Row-tile size: 16-aligned (bf16 sublane packing), fits the VMEM budget."""
    budget, _ = _vmem_budget()
    tm = min(target, _round_up(m, 16))
    avail = budget - fixed_bytes
    if avail >= per_row_bytes * 16:
        max_rows = max(16, (avail // per_row_bytes) // 16 * 16)
        tm = min(tm, max_rows)
    else:
        # TODO(synk): weights larger than the VMEM budget would need a K/N
        # tiled fallback; BERT-sized weights always fit.
        tm = min(tm, 16)
    return max(16, int(tm))


def _pad_rows(a, multiple):
    m = a.shape[0]
    pad = (-m) % multiple
    if pad == 0:
        return a
    return jnp.pad(a, ((0, pad),) + ((0, 0),) * (a.ndim - 1))


# ----------------------------------------------------------------------------
# Kernel 1: fused QKV projection, weight-resident, head-major (3, M, H) output
# ----------------------------------------------------------------------------
def _qkv_kernel(x_ref, w_ref, b_ref, o_ref, *, hidden):
    y = jnp.dot(x_ref[...], w_ref[...], preferred_element_type=jnp.float32)
    y = (y + b_ref[...]).astype(o_ref.dtype)              # (tm, 3H)
    # Split on 128-aligned (multiple-of-H) lane boundaries; three dense stores.
    o_ref[0] = y[:, :hidden]
    o_ref[1] = y[:, hidden:2 * hidden]
    o_ref[2] = y[:, 2 * hidden:]


def linear_qkv(x, w, b, out_dtype=jnp.bfloat16, tm_target=512):
    """x:(M,H) bf16 @ w:(H,3H) bf16 + b:(3H,) f32 -> (3, M, H) out_dtype."""
    M, K = x.shape
    N = w.shape[1]
    H = N // 3
    fixed = 2 * (K * N * 2) + 2 * (N * 4)              # dbuf weight + bias
    per_row = 2 * (K * 2) + 2 * (N * 2) + N * 4        # x, out (dbuf) + f32 tmp
    tm = _choose_rows(M, tm_target, fixed, per_row)
    xp = _pad_rows(x, tm)
    Mp = xp.shape[0]
    out = pl.pallas_call(
        functools.partial(_qkv_kernel, hidden=H),
        out_shape=jax.ShapeDtypeStruct((3, Mp, H), out_dtype),
        grid=(Mp // tm,),
        in_specs=[
            pl.BlockSpec((tm, K), lambda i: (i, 0)),
            pl.BlockSpec((K, N), lambda i: (0, 0)),      # weight resident
            pl.BlockSpec((1, N), lambda i: (0, 0)),
        ],
        out_specs=pl.BlockSpec((3, tm, H), lambda i: (0, i, 0)),
        compiler_params=_compiler_params(("parallel",)),
    )(xp, w, b.reshape(1, N).astype(jnp.float32))
    return out if Mp == M else out[:, :M, :]


# ----------------------------------------------------------------------------
# Kernel 2: multi-head attention over head groups (grid = (B, head_groups))
# ----------------------------------------------------------------------------
def _attention_kernel(qkv_ref, m_ref, o_ref, *, heads_per_group, head_dim):
    # qkv_ref: (3, 1, S, Dg) bf16 (Q already pre-scaled by 1/sqrt(head_dim))
    mask = m_ref[0].astype(jnp.float32)                  # (1, S) additive mask
    q = qkv_ref[0, 0]
    k = qkv_ref[1, 0]
    v = qkv_ref[2, 0]
    ctxs = []
    for h in range(heads_per_group):                     # small unroll (<=2 BERT)
        lo = h * head_dim
        qh = q[:, lo:lo + head_dim]
        kh = k[:, lo:lo + head_dim]
        vh = v[:, lo:lo + head_dim]
        # q @ k^T contracting the last dims (no explicit transpose)
        s = jax.lax.dot_general(qh, kh, (((1,), (1,)), ((), ())),
                                preferred_element_type=jnp.float32)
        s = s + mask                                     # broadcast over rows
        s = s - jnp.max(s, axis=-1, keepdims=True)
        p = jnp.exp(s)
        p = p * pl.reciprocal(jnp.sum(p, axis=-1, keepdims=True), approx=True)
        ctxs.append(jnp.dot(p.astype(vh.dtype), vh,
                            preferred_element_type=jnp.float32))
    ctx = ctxs[0] if len(ctxs) == 1 else jnp.concatenate(ctxs, axis=-1)
    o_ref[0] = ctx.astype(o_ref.dtype)                   # one lane-dense store


def multi_head_attention(qkv3, ext_mask, num_heads, out_dtype=jnp.bfloat16):
    """qkv3: (3, B, S, H) head-major fused projection; ext_mask: (B, 1, S)."""
    # TODO(synk): for very long sequences restructure as a flash-style kernel
    # with an additional q-block grid axis and online softmax.
    _, B, S, H = qkv3.shape
    head_dim = H // num_heads
    hpg = max(1, 128 // head_dim)                        # 128-lane group width
    hpg = min(hpg, num_heads)
    while num_heads % hpg:
        hpg -= 1
    dg = hpg * head_dim
    num_groups = H // dg
    return pl.pallas_call(
        functools.partial(_attention_kernel, heads_per_group=hpg,
                          head_dim=head_dim),
        out_shape=jax.ShapeDtypeStruct((B, S, H), out_dtype),
        grid=(B, num_groups),
        in_specs=[
            pl.BlockSpec((3, 1, S, dg), lambda b, g: (0, b, 0, g)),
            pl.BlockSpec((1, 1, S), lambda b, g: (b, 0, 0)),
        ],
        out_specs=pl.BlockSpec((1, S, dg), lambda b, g: (b, 0, g)),
        compiler_params=_compiler_params(("parallel", "parallel")),
    )(qkv3, ext_mask)


# ----------------------------------------------------------------------------
# Kernel 3: attention-output dense + residual + LayerNorm (weight resident)
# ----------------------------------------------------------------------------
def _linear_res_ln_kernel(x_ref, w_ref, b_ref, r_ref, g_ref, bt_ref, o_ref):
    y = jnp.dot(x_ref[...], w_ref[...], preferred_element_type=jnp.float32)
    y = y + b_ref[...] + r_ref[...].astype(jnp.float32)
    mean = jnp.mean(y, axis=-1, keepdims=True)
    c = y - mean
    var = jnp.mean(c * c, axis=-1, keepdims=True)
    yn = c * jax.lax.rsqrt(var + LN_EPS)
    o_ref[...] = (yn * g_ref[...] + bt_ref[...]).astype(o_ref.dtype)


def linear_residual_layernorm(x, w, b, residual, gamma, beta,
                              out_dtype=jnp.bfloat16, tm_target=1024):
    """LayerNorm(x @ w + b + residual). x:(M,K) bf16, w:(K,N) bf16."""
    M, K = x.shape
    N = w.shape[1]
    fixed = 2 * (K * N * 2) + 3 * 2 * (N * 4)
    per_row = 2 * (K * 2 + 2 * N * 2) + 2 * (N * 4)
    tm = _choose_rows(M, tm_target, fixed, per_row)
    xp = _pad_rows(x, tm)
    rp = _pad_rows(residual, tm)
    Mp = xp.shape[0]
    out = pl.pallas_call(
        _linear_res_ln_kernel,
        out_shape=jax.ShapeDtypeStruct((Mp, N), out_dtype),
        grid=(Mp // tm,),
        in_specs=[
            pl.BlockSpec((tm, K), lambda i: (i, 0)),
            pl.BlockSpec((K, N), lambda i: (0, 0)),      # weight resident
            pl.BlockSpec((1, N), lambda i: (0, 0)),
            pl.BlockSpec((tm, N), lambda i: (i, 0)),
            pl.BlockSpec((1, N), lambda i: (0, 0)),
            pl.BlockSpec((1, N), lambda i: (0, 0)),
        ],
        out_specs=pl.BlockSpec((tm, N), lambda i: (i, 0)),
        compiler_params=_compiler_params(("parallel",)),
    )(xp, w, b.reshape(1, N).astype(jnp.float32), rp,
      gamma.reshape(1, N).astype(jnp.float32),
      beta.reshape(1, N).astype(jnp.float32))
    return out if Mp == M else out[:M]


# ----------------------------------------------------------------------------
# Kernel 4: fused FFN (Wi + gelu + Wf) + residual + LayerNorm
#           (BertIntermediate + BertOutput). The 4H intermediate stays in VMEM.
# ----------------------------------------------------------------------------
def _ffn_res_ln_kernel(x_ref, wi_ref, bi_ref, wf_ref, bf_ref, g_ref, b_ref,
                       o_ref):
    x = x_ref[...]                                            # (tm, H) bf16
    h = jnp.dot(x, wi_ref[...], preferred_element_type=jnp.float32)
    h = _gelu(h + bi_ref[...])                                # (tm, I) f32
    y = jnp.dot(h.astype(wf_ref.dtype), wf_ref[...],
                preferred_element_type=jnp.float32) + bf_ref[...]
    y = y + x.astype(jnp.float32)                             # residual
    mean = jnp.mean(y, axis=-1, keepdims=True)
    c = y - mean
    var = jnp.mean(c * c, axis=-1, keepdims=True)
    yn = c * jax.lax.rsqrt(var + LN_EPS)
    o_ref[...] = (yn * g_ref[...] + b_ref[...]).astype(o_ref.dtype)


def ffn_residual_layernorm(x, wi, bi, wf, bf, gamma, beta,
                           out_dtype=jnp.bfloat16, tm_target=512):
    M, H = x.shape
    I = wi.shape[1]
    fixed = 2 * (H * I * 2) * 2 + 2 * ((I + 3 * H) * 4)
    per_row = 2 * (2 * H * 2) + I * 4 + I * 2 + 2 * (H * 4)
    tm = _choose_rows(M, tm_target, fixed, per_row)
    xp = _pad_rows(x, tm)
    Mp = xp.shape[0]
    out = pl.pallas_call(
        _ffn_res_ln_kernel,
        out_shape=jax.ShapeDtypeStruct((Mp, H), out_dtype),
        grid=(Mp // tm,),
        in_specs=[
            pl.BlockSpec((tm, H), lambda i: (i, 0)),
            pl.BlockSpec((H, I), lambda i: (0, 0)),      # Wi resident
            pl.BlockSpec((1, I), lambda i: (0, 0)),
            pl.BlockSpec((I, H), lambda i: (0, 0)),      # Wf resident
            pl.BlockSpec((1, H), lambda i: (0, 0)),
            pl.BlockSpec((1, H), lambda i: (0, 0)),
            pl.BlockSpec((1, H), lambda i: (0, 0)),
        ],
        out_specs=pl.BlockSpec((tm, H), lambda i: (i, 0)),
        compiler_params=_compiler_params(("parallel",)),
    )(xp, wi, bi.reshape(1, I).astype(jnp.float32), wf,
      bf.reshape(1, H).astype(jnp.float32),
      gamma.reshape(1, H).astype(jnp.float32),
      beta.reshape(1, H).astype(jnp.float32))
    return out if Mp == M else out[:M]


# ----------------------------------------------------------------------------
# Tucker (multi_mode_dot) reconstruction of the stacked per-layer Q/K/V weights
# ----------------------------------------------------------------------------
def _tucker_to_weight(core, a, b, c):
    # tl.tenalg.multi_mode_dot(core, [a, b, c]):
    #   w[l, m, n] = sum_{p,q,r} a[l,p] b[m,q] c[n,r] core[p,q,r]
    # F.linear uses w[l] as (out=m, in=n); we return the x @ W layout (in,out).
    # Weight-only and tiny -> plain JAX, runs once per forward.
    return jnp.einsum("pqr,lp,mq,nr->lnm", core, a, b, c)   # (L, H_in, H_out)


# ----------------------------------------------------------------------------
# Encoder forward (matches BertEncoder_tucker_vertical.forward semantics)
# ----------------------------------------------------------------------------
def bert_encoder_tucker_vertical(params, hidden_states, ext_attention_mask,
                                 num_heads, output_all_encoded_layers=True):
    B, S, H = hidden_states.shape
    head_dim = H // num_heads
    scale = 1.0 / math.sqrt(head_dim)

    wq = _tucker_to_weight(params["core_q"], params["a_q"],
                           params["b_q"], params["c_q"])
    wk = _tucker_to_weight(params["core_k"], params["a_k"],
                           params["b_k"], params["c_k"])
    wv = _tucker_to_weight(params["core_v"], params["a_v"],
                           params["b_v"], params["c_v"])
    # Fuse Q/K/V into one (L, H, 3H) projection; fold the 1/sqrt(d) attention
    # scale into the Q weight so the attention kernel never scales scores.
    w_qkv = jnp.concatenate([wq * scale, wk, wv], axis=-1).astype(jnp.bfloat16)

    # Additive padding mask broadcast over query rows; accepts (B,1,S) or
    # HF-style (B,1,1,S). Arbitrary (B,1,S,S) masks are not supported.
    assert ext_attention_mask.size == B * S, "expected (B,1,S)-style mask"
    ext_mask = ext_attention_mask.astype(jnp.float32).reshape(B, 1, S)

    x = hidden_states.reshape(B * S, H).astype(jnp.bfloat16)
    M = B * S

    all_layers = []
    for i, lp in enumerate(params["layers"]):
        b_qkv = jnp.concatenate([lp["bias_q"] * scale, lp["bias_k"],
                                 lp["bias_v"]]).astype(jnp.float32)
        qkv3 = linear_qkv(x, w_qkv[i], b_qkv)                    # (3, M, H)
        ctx = multi_head_attention(qkv3.reshape(3, B, S, H), ext_mask,
                                   num_heads)                    # (B, S, H)
        # BertSelfOutput: LN(dense(ctx) + hidden_states)   (dropout = identity)
        x = linear_residual_layernorm(ctx.reshape(M, H),
                                      lp["wo"].astype(jnp.bfloat16), lp["bo"],
                                      x, lp["ln1_g"], lp["ln1_b"])
        # BertIntermediate + BertOutput: LN(Wf(gelu(Wi x)) + x), fused
        x = ffn_residual_layernorm(x, lp["wi"].astype(jnp.bfloat16), lp["bi"],
                                   lp["wf"].astype(jnp.bfloat16), lp["bf"],
                                   lp["ln2_g"], lp["ln2_b"])
        if output_all_encoded_layers:
            all_layers.append(x.reshape(B, S, H).astype(hidden_states.dtype))
    if not output_all_encoded_layers:
        all_layers.append(x.reshape(B, S, H).astype(hidden_states.dtype))
    return all_layers


# ----------------------------------------------------------------------------
# Deterministic parameter construction
# ----------------------------------------------------------------------------
def init_params(key, cfg):
    H, I = cfg["hidden_size"], cfg["intermediate_size"]
    L = cfg["num_layers"]
    r1, r2 = cfg["rank_fst"], cfg["rank_snd"]
    std = cfg["initializer_range"]
    keys = iter(jax.random.split(key, 128))

    def nrm(shape, s=std):
        return s * jax.random.normal(next(keys), shape, jnp.float32)

    params = {
        # shared Tucker factors (BertEncoder_tucker_vertical parameters)
        "core_q": nrm((r1, r2, r2), 0.1), "a_q": nrm((L, r1), 0.1),
        "b_q": nrm((H, r2), 0.1), "c_q": nrm((H, r2), 0.1),
        "core_k": nrm((r1, r2, r2), 0.1), "a_k": nrm((L, r1), 0.1),
        "b_k": nrm((H, r2), 0.1), "c_k": nrm((H, r2), 0.1),
        "core_v": nrm((r1, r2, r2), 0.1), "a_v": nrm((L, r1), 0.1),
        "b_v": nrm((H, r2), 0.1), "c_v": nrm((H, r2), 0.1),
        "layers": [],
    }
    for _ in range(L):
        lp = {
            "bias_q": jnp.zeros((H,), jnp.float32),
            "bias_k": jnp.zeros((H,), jnp.float32),
            "bias_v": jnp.zeros((H,), jnp.float32),
            "wo": nrm((H, H)), "bo": jnp.zeros((H,), jnp.float32),
            "ln1_g": jnp.ones((H,), jnp.float32),
            "ln1_b": jnp.zeros((H,), jnp.float32),
            "wi": nrm((H, I)), "bi": jnp.zeros((I,), jnp.float32),
            "wf": nrm((I, H)), "bf": jnp.zeros((H,), jnp.float32),
            "ln2_g": jnp.ones((H,), jnp.float32),
            "ln2_b": jnp.zeros((H,), jnp.float32),
        }
        params["layers"].append(lp)
    return params


# ----------------------------------------------------------------------------
if __name__ == "__main__":
    cfg = dict(
        hidden_size=32,
        num_heads=4,
        intermediate_size=64,
        num_layers=2,
        rank_fst=4,
        rank_snd=16,
        initializer_range=0.02,
    )
    B, S = 2, 8

    root = jax.random.PRNGKey(0)
    k_param, k_hidden = jax.random.split(root, 2)

    params = init_params(k_param, cfg)
    hidden_states = jax.random.normal(k_hidden, (B, S, cfg["hidden_size"]),
                                      jnp.float32)
    # 0/1 padding mask -> extended additive mask (as BertModel builds before
    # calling the encoder): (1 - mask) * -10000, broadcast over query positions.
    mask01 = jnp.array([[1, 1, 1, 1, 1, 1, 1, 1],
                        [1, 1, 1, 1, 1, 1, 0, 0]], jnp.float32)
    ext_mask = ((1.0 - mask01) * -10000.0).reshape(B, 1, S)

    fwd = jax.jit(functools.partial(bert_encoder_tucker_vertical,
                                    num_heads=cfg["num_heads"],
                                    output_all_encoded_layers=True))
    layers_out = fwd(params, hidden_states, ext_mask)
    layers_out = jax.block_until_ready(layers_out)

    assert len(layers_out) == cfg["num_layers"]
    assert all(o.shape == (B, S, cfg["hidden_size"]) for o in layers_out)
    assert all(bool(jnp.all(jnp.isfinite(o.astype(jnp.float32))))
               for o in layers_out)
    print("KERNEL_OK")
</pallas_src>

<mosaic_0001>
module attributes {stable_mosaic.version = 11 : i64} {
  func.func @_attention_kernel(%arg0: i32, %arg1: i32, %arg2: memref<3x1x8x32xbf16, #tpu.memory_space<vmem>>, %arg3: memref<1x1x8xf32, #tpu.memory_space<vmem>>, %arg4: memref<1x8x32xbf16, #tpu.memory_space<vmem>>) attributes {dimension_semantics = [#tpu.dimension_semantics<parallel>, #tpu.dimension_semantics<parallel>], iteration_bounds = array<i64: 2, 1>, scalar_prefetch = 0 : i64, scratch_operands = 0 : i64, tpu.core_type = #tpu.core_type<tc>, window_params = [{transform_indices = @transform_0, window_bounds = array<i64: 3, 1, 8, 32>}, {transform_indices = @transform_1, window_bounds = array<i64: 1, 1, 8>}, {transform_indices = @transform_2, window_bounds = array<i64: 1, 8, 32>}]} {
    %c0 = arith.constant 0 : index
    %c0_0 = arith.constant 0 : index
    %c0_1 = arith.constant 0 : index
    %0 = vector.load %arg3[%c0, %c0_0, %c0_1] : memref<1x1x8xf32, #tpu.memory_space<vmem>>, vector<1x1x8xf32>
    %1 = vector.shape_cast %0 : vector<1x1x8xf32> to vector<1x8xf32>
    %c0_2 = arith.constant 0 : index
    %c0_3 = arith.constant 0 : index
    %c0_4 = arith.constant 0 : index
    %c0_5 = arith.constant 0 : index
    %2 = vector.load %arg2[%c0_2, %c0_3, %c0_4, %c0_5] : memref<3x1x8x32xbf16, #tpu.memory_space<vmem>>, vector<1x1x8x32xbf16>
    %3 = vector.shape_cast %2 : vector<1x1x8x32xbf16> to vector<8x32xbf16>
    %c1 = arith.constant 1 : index
    %c0_6 = arith.constant 0 : index
    %c0_7 = arith.constant 0 : index
    %c0_8 = arith.constant 0 : index
    %4 = vector.load %arg2[%c1, %c0_6, %c0_7, %c0_8] : memref<3x1x8x32xbf16, #tpu.memory_space<vmem>>, vector<1x1x8x32xbf16>
    %5 = vector.shape_cast %4 : vector<1x1x8x32xbf16> to vector<8x32xbf16>
    %c2 = arith.constant 2 : index
    %c0_9 = arith.constant 0 : index
    %c0_10 = arith.constant 0 : index
    %c0_11 = arith.constant 0 : index
    %6 = vector.load %arg2[%c2, %c0_9, %c0_10, %c0_11] : memref<3x1x8x32xbf16, #tpu.memory_space<vmem>>, vector<1x1x8x32xbf16>
    %7 = vector.shape_cast %6 : vector<1x1x8x32xbf16> to vector<8x32xbf16>
    %8 = vector.extract_strided_slice %3 {offsets = [0, 0], sizes = [8, 8], strides = [1, 1]} : vector<8x32xbf16> to vector<8x8xbf16>
    %9 = vector.extract_strided_slice %5 {offsets = [0, 0], sizes = [8, 8], strides = [1, 1]} : vector<8x32xbf16> to vector<8x8xbf16>
    %10 = vector.extract_strided_slice %7 {offsets = [0, 0], sizes = [8, 8], strides = [1, 1]} : vector<8x32xbf16> to vector<8x8xbf16>
    %cst = arith.constant dense<0.000000e+00> : vector<8x8xf32>
    %11 = tpu.matmul %8, %9, %cst {dimension_numbers = #tpu.dot_dimension_numbers<[1], [1], [0], [0], [0, 0, 1, 0], [], []>} : vector<8x8xbf16>, vector<8x8xbf16>, vector<8x8xf32> -> vector<8x8xf32>
    %12 = vector.broadcast %1 : vector<1x8xf32> to vector<8x8xf32>
    %13 = arith.addf %11, %12 : vector<8x8xf32>
    %cst_12 = arith.constant dense<0xFF800000> : vector<8xf32>
    %14 = vector.multi_reduction <maximumf>, %13, %cst_12 [1] : vector<8x8xf32> to vector<8xf32>
    %15 = vector.shape_cast %14 : vector<8xf32> to vector<8x1xf32>
    %16 = vector.broadcast %15 : vector<8x1xf32> to vector<8x8xf32>
    %17 = arith.subf %13, %16 : vector<8x8xf32>
    %18 = math.exp %17 : vector<8x8xf32>
    %cst_13 = arith.constant dense<0.000000e+00> : vector<8xf32>
    %19 = vector.multi_reduction <add>, %18, %cst_13 [1] : vector<8x8xf32> to vector<8xf32>
    %20 = vector.shape_cast %19 : vector<8xf32> to vector<8x1xf32>
    %21 = tpu.reciprocal %20 {approx = true} : vector<8x1xf32> -> vector<8x1xf32>
    %22 = vector.broadcast %21 : vector<8x1xf32> to vector<8x8xf32>
    %23 = arith.mulf %18, %22 : vector<8x8xf32>
    %24 = arith.truncf %23 : vector<8x8xf32> to vector<8x8xbf16>
    %cst_14 = arith.constant dense<0.000000e+00> : vector<8x8xf32>
    %25 = tpu.matmul %24, %10, %cst_14 {dimension_numbers = #tpu.dot_dimension_numbers<[1], [0], [0], [1], [0, 0, 1, 1], [], []>} : vector<8x8xbf16>, vector<8x8xbf16>, vector<8x8xf32> -> vector<8x8xf32>
    %26 = vector.extract_strided_slice %3 {offsets = [0, 8], sizes = [8, 8], strides = [1, 1]} : vector<8x32xbf16> to vector<8x8xbf16>
    %27 = vector.extract_strided_slice %5 {offsets = [0, 8], sizes = [8, 8], strides = [1, 1]} : vector<8x32xbf16> to vector<8x8xbf16>
    %28 = vector.extract_strided_slice %7 {offsets = [0, 8], sizes = [8, 8], strides = [1, 1]} : vector<8x32xbf16> to vector<8x8xbf16>
    %cst_15 = arith.constant dense<0.000000e+00> : vector<8x8xf32>
    %29 = tpu.matmul %26, %27, %cst_15 {dimension_numbers = #tpu.dot_dimension_numbers<[1], [1], [0], [0], [0, 0, 1, 0], [], []>} : vector<8x8xbf16>, vector<8x8xbf16>, vector<8x8xf32> -> vector<8x8xf32>
    %30 = vector.broadcast %1 : vector<1x8xf32> to vector<8x8xf32>
    %31 = arith.addf %29, %30 : vector<8x8xf32>
    %cst_16 = arith.constant dense<0xFF800000> : vector<8xf32>
    %32 = vector.multi_reduction <maximumf>, %31, %cst_16 [1] : vector<8x8xf32> to vector<8xf32>
    %33 = vector.shape_cast %32 : vector<8xf32> to vector<8x1xf32>
    %34 = vector.broadcast %33 : vector<8x1xf32> to vector<8x8xf32>
    %35 = arith.subf %31, %34 : vector<8x8xf32>
    %36 = math.exp %35 : vector<8x8xf32>
    %cst_17 = arith.constant dense<0.000000e+00> : vector<8xf32>
    %37 = vector.multi_reduction <add>, %36, %cst_17 [1] : vector<8x8xf32> to vector<8xf32>
    %38 = vector.shape_cast %37 : vector<8xf32> to vector<8x1xf32>
    %39 = tpu.reciprocal %38 {approx = true} : vector<8x1xf32> -> vector<8x1xf32>
    %40 = vector.broadcast %39 : vector<8x1xf32> to vector<8x8xf32>
    %41 = arith.mulf %36, %40 : vector<8x8xf32>
    %42 = arith.truncf %41 : vector<8x8xf32> to vector<8x8xbf16>
    %cst_18 = arith.constant dense<0.000000e+00> : vector<8x8xf32>
    %43 = tpu.matmul %42, %28, %cst_18 {dimension_numbers = #tpu.dot_dimension_numbers<[1], [0], [0], [1], [0, 0, 1, 1], [], []>} : vector<8x8xbf16>, vector<8x8xbf16>, vector<8x8xf32> -> vector<8x8xf32>
    %44 = vector.extract_strided_slice %3 {offsets = [0, 16], sizes = [8, 8], strides = [1, 1]} : vector<8x32xbf16> to vector<8x8xbf16>
    %45 = vector.extract_strided_slice %5 {offsets = [0, 16], sizes = [8, 8], strides = [1, 1]} : vector<8x32xbf16> to vector<8x8xbf16>
    %46 = vector.extract_strided_slice %7 {offsets = [0, 16], sizes = [8, 8], strides = [1, 1]} : vector<8x32xbf16> to vector<8x8xbf16>
    %cst_19 = arith.constant dense<0.000000e+00> : vector<8x8xf32>
    %47 = tpu.matmul %44, %45, %cst_19 {dimension_numbers = #tpu.dot_dimension_numbers<[1], [1], [0], [0], [0, 0, 1, 0], [], []>} : vector<8x8xbf16>, vector<8x8xbf16>, vector<8x8xf32> -> vector<8x8xf32>
    %48 = vector.broadcast %1 : vector<1x8xf32> to vector<8x8xf32>
    %49 = arith.addf %47, %48 : vector<8x8xf32>
    %cst_20 = arith.constant dense<0xFF800000> : vector<8xf32>
    %50 = vector.multi_reduction <maximumf>, %49, %cst_20 [1] : vector<8x8xf32> to vector<8xf32>
    %51 = vector.shape_cast %50 : vector<8xf32> to vector<8x1xf32>
    %52 = vector.broadcast %51 : vector<8x1xf32> to vector<8x8xf32>
    %53 = arith.subf %49, %52 : vector<8x8xf32>
    %54 = math.exp %53 : vector<8x8xf32>
    %cst_21 = arith.constant dense<0.000000e+00> : vector<8xf32>
    %55 = vector.multi_reduction <add>, %54, %cst_21 [1] : vector<8x8xf32> to vector<8xf32>
    %56 = vector.shape_cast %55 : vector<8xf32> to vector<8x1xf32>
    %57 = tpu.reciprocal %56 {approx = true} : vector<8x1xf32> -> vector<8x1xf32>
    %58 = vector.broadcast %57 : vector<8x1xf32> to vector<8x8xf32>
    %59 = arith.mulf %54, %58 : vector<8x8xf32>
    %60 = arith.truncf %59 : vector<8x8xf32> to vector<8x8xbf16>
    %cst_22 = arith.constant dense<0.000000e+00> : vector<8x8xf32>
    %61 = tpu.matmul %60, %46, %cst_22 {dimension_numbers = #tpu.dot_dimension_numbers<[1], [0], [0], [1], [0, 0, 1, 1], [], []>} : vector<8x8xbf16>, vector<8x8xbf16>, vector<8x8xf32> -> vector<8x8xf32>
    %62 = vector.extract_strided_slice %3 {offsets = [0, 24], sizes = [8, 8], strides = [1, 1]} : vector<8x32xbf16> to vector<8x8xbf16>
    %63 = vector.extract_strided_slice %5 {offsets = [0, 24], sizes = [8, 8], strides = [1, 1]} : vector<8x32xbf16> to vector<8x8xbf16>
    %64 = vector.extract_strided_slice %7 {offsets = [0, 24], sizes = [8, 8], strides = [1, 1]} : vector<8x32xbf16> to vector<8x8xbf16>
    %cst_23 = arith.constant dense<0.000000e+00> : vector<8x8xf32>
    %65 = tpu.matmul %62, %63, %cst_23 {dimension_numbers = #tpu.dot_dimension_numbers<[1], [1], [0], [0], [0, 0, 1, 0], [], []>} : vector<8x8xbf16>, vector<8x8xbf16>, vector<8x8xf32> -> vector<8x8xf32>
    %66 = vector.broadcast %1 : vector<1x8xf32> to vector<8x8xf32>
    %67 = arith.addf %65, %66 : vector<8x8xf32>
    %cst_24 = arith.constant dense<0xFF800000> : vector<8xf32>
    %68 = vector.multi_reduction <maximumf>, %67, %cst_24 [1] : vector<8x8xf32> to vector<8xf32>
    %69 = vector.shape_cast %68 : vector<8xf32> to vector<8x1xf32>
    %70 = vector.broadcast %69 : vector<8x1xf32> to vector<8x8xf32>
    %71 = arith.subf %67, %70 : vector<8x8xf32>
    %72 = math.exp %71 : vector<8x8xf32>
    %cst_25 = arith.constant dense<0.000000e+00> : vector<8xf32>
    %73 = vector.multi_reduction <add>, %72, %cst_25 [1] : vector<8x8xf32> to vector<8xf32>
    %74 = vector.shape_cast %73 : vector<8xf32> to vector<8x1xf32>
    %75 = tpu.reciprocal %74 {approx = true} : vector<8x1xf32> -> vector<8x1xf32>
    %76 = vector.broadcast %75 : vector<8x1xf32> to vector<8x8xf32>
    %77 = arith.mulf %72, %76 : vector<8x8xf32>
    %78 = arith.truncf %77 : vector<8x8xf32> to vector<8x8xbf16>
    %cst_26 = arith.constant dense<0.000000e+00> : vector<8x8xf32>
    %79 = tpu.matmul %78, %64, %cst_26 {dimension_numbers = #tpu.dot_dimension_numbers<[1], [0], [0], [1], [0, 0, 1, 1], [], []>} : vector<8x8xbf16>, vector<8x8xbf16>, vector<8x8xf32> -> vector<8x8xf32>
    %80 = tpu.concatenate %25, %43, %61, %79 in 1 : vector<8x8xf32>, vector<8x8xf32>, vector<8x8xf32>, vector<8x8xf32> -> vector<8x32xf32>
    %81 = arith.truncf %80 : vector<8x32xf32> to vector<8x32xbf16>
    %c0_27 = arith.constant 0 : index
    %c0_28 = arith.constant 0 : index
    %c0_29 = arith.constant 0 : index
    %82 = vector.load %arg4[%c0_27, %c0_28, %c0_29] : memref<1x8x32xbf16, #tpu.memory_space<vmem>>, vector<1x8x32xbf16>
    %83 = vector.shape_cast %82 : vector<1x8x32xbf16> to vector<8x32xbf16>
    %84 = vector.shape_cast %81 : vector<8x32xbf16> to vector<1x8x32xbf16>
    tpu.vector_store %arg4[%c0_27, %c0_28, %c0_29], %84 {strides = array<i32>} : memref<1x8x32xbf16, #tpu.memory_space<vmem>>, vector<1x8x32xbf16>,
    return
  }
  func.func @transform_0(%arg0: i32, %arg1: i32) -> (i32, i32, i32, i32) {
    %c0_i32 = arith.constant 0 : i32
    %c0_i32_0 = arith.constant 0 : i32
    %c0_i32_1 = arith.constant 0 : i32
    return %c0_i32, %arg0, %c0_i32_0, %arg1 : i32, i32, i32, i32
  }
  func.func @transform_1(%arg0: i32, %arg1: i32) -> (i32, i32, i32) {
    %c0_i32 = arith.constant 0 : i32
    %c0_i32_0 = arith.constant 0 : i32
    %c0_i32_1 = arith.constant 0 : i32
    return %arg0, %c0_i32, %c0_i32_0 : i32, i32, i32
  }
  func.func @transform_2(%arg0: i32, %arg1: i32) -> (i32, i32, i32) {
    %c0_i32 = arith.constant 0 : i32
    %c0_i32_0 = arith.constant 0 : i32
    return %arg0, %c0_i32, %arg1 : i32, i32, i32
  }
}

module attributes {stable_mosaic.version = 11 : i64} {
  func.func @_linear_res_ln_kernel(%arg0: i32, %arg1: memref<16x32xbf16, #tpu.memory_space<vmem>>, %arg2: memref<32x32xbf16, #tpu.memory_space<vmem>>, %arg3: memref<1x32xf32, #tpu.memory_space<vmem>>, %arg4: memref<16x32xbf16, #tpu.memory_space<vmem>>, %arg5: memref<1x32xf32, #tpu.memory_space<vmem>>, %arg6: memref<1x32xf32, #tpu.memory_space<vmem>>, %arg7: memref<16x32xbf16, #tpu.memory_space<vmem>>) attributes {dimension_semantics = [#tpu.dimension_semantics<parallel>], iteration_bounds = array<i64: 1>, scalar_prefetch = 0 : i64, scratch_operands = 0 : i64, tpu.core_type = #tpu.core_type<tc>, window_params = [{transform_indices = @transform_0, window_bounds = array<i64: 16, 32>}, {pipeline_mode = #tpu.pipeline_mode<synchronous>, transform_indices = @transform_1, window_bounds = array<i64: 32, 32>}, {pipeline_mode = #tpu.pipeline_mode<synchronous>, transform_indices = @transform_2, window_bounds = array<i64: 1, 32>}, {transform_indices = @transform_3, window_bounds = array<i64: 16, 32>}, {pipeline_mode = #tpu.pipeline_mode<synchronous>, transform_indices = @transform_4, window_bounds = array<i64: 1, 32>}, {pipeline_mode = #tpu.pipeline_mode<synchronous>, transform_indices = @transform_5, window_bounds = array<i64: 1, 32>}, {transform_indices = @transform_6, window_bounds = array<i64: 16, 32>}]} {
    %c0 = arith.constant 0 : index
    %c0_0 = arith.constant 0 : index
    %0 = vector.load %arg1[%c0, %c0_0] : memref<16x32xbf16, #tpu.memory_space<vmem>>, vector<16x32xbf16>
    %c0_1 = arith.constant 0 : index
    %c0_2 = arith.constant 0 : index
    %1 = vector.load %arg2[%c0_1, %c0_2] : memref<32x32xbf16, #tpu.memory_space<vmem>>, vector<32x32xbf16>
    %cst = arith.constant dense<0.000000e+00> : vector<16x32xf32>
    %2 = tpu.matmul %0, %1, %cst {dimension_numbers = #tpu.dot_dimension_numbers<[1], [0], [0], [1], [0, 0, 1, 1], [], []>} : vector<16x32xbf16>, vector<32x32xbf16>, vector<16x32xf32> -> vector<16x32xf32>
    %c0_3 = arith.constant 0 : index
    %c0_4 = arith.constant 0 : index
    %3 = vector.load %arg3[%c0_3, %c0_4] : memref<1x32xf32, #tpu.memory_space<vmem>>, vector<1x32xf32>
    %4 = vector.broadcast %3 : vector<1x32xf32> to vector<16x32xf32>
    %5 = arith.addf %2, %4 : vector<16x32xf32>
    %c0_5 = arith.constant 0 : index
    %c0_6 = arith.constant 0 : index
    %6 = vector.load %arg4[%c0_5, %c0_6] : memref<16x32xbf16, #tpu.memory_space<vmem>>, vector<16x32xbf16>
    %7 = arith.extf %6 : vector<16x32xbf16> to vector<16x32xf32>
    %8 = arith.addf %5, %7 : vector<16x32xf32>
    %cst_7 = arith.constant dense<0.000000e+00> : vector<16xf32>
    %9 = vector.multi_reduction <add>, %8, %cst_7 [1] : vector<16x32xf32> to vector<16xf32>
    %10 = vector.shape_cast %9 : vector<16xf32> to vector<16x1xf32>
    %cst_8 = arith.constant 3.200000e+01 : f32
    %11 = vector.broadcast %cst_8 : f32 to vector<16x1xf32>
    %12 = arith.divf %10, %11 : vector<16x1xf32>
    %13 = vector.broadcast %12 : vector<16x1xf32> to vector<16x32xf32>
    %14 = arith.subf %8, %13 : vector<16x32xf32>
    %15 = arith.mulf %14, %14 : vector<16x32xf32>
    %cst_9 = arith.constant dense<0.000000e+00> : vector<16xf32>
    %16 = vector.multi_reduction <add>, %15, %cst_9 [1] : vector<16x32xf32> to vector<16xf32>
    %17 = vector.shape_cast %16 : vector<16xf32> to vector<16x1xf32>
    %cst_10 = arith.constant 3.200000e+01 : f32
    %18 = vector.broadcast %cst_10 : f32 to vector<16x1xf32>
    %19 = arith.divf %17, %18 : vector<16x1xf32>
    %cst_11 = arith.constant 9.99999996E-13 : f32
    %20 = vector.broadcast %cst_11 : f32 to vector<16x1xf32>
    %21 = arith.addf %19, %20 : vector<16x1xf32>
    %22 = math.rsqrt %21 : vector<16x1xf32>
    %23 = vector.broadcast %22 : vector<16x1xf32> to vector<16x32xf32>
    %24 = arith.mulf %14, %23 : vector<16x32xf32>
    %c0_12 = arith.constant 0 : index
    %c0_13 = arith.constant 0 : index
    %25 = vector.load %arg5[%c0_12, %c0_13] : memref<1x32xf32, #tpu.memory_space<vmem>>, vector<1x32xf32>
    %26 = vector.broadcast %25 : vector<1x32xf32> to vector<16x32xf32>
    %27 = arith.mulf %24, %26 : vector<16x32xf32>
    %c0_14 = arith.constant 0 : index
    %c0_15 = arith.constant 0 : index
    %28 = vector.load %arg6[%c0_14, %c0_15] : memref<1x32xf32, #tpu.memory_space<vmem>>, vector<1x32xf32>
    %29 = vector.broadcast %28 : vector<1x32xf32> to vector<16x32xf32>
    %30 = arith.addf %27, %29 : vector<16x32xf32>
    %31 = arith.truncf %30 : vector<16x32xf32> to vector<16x32xbf16>
    %c0_16 = arith.constant 0 : index
    %c0_17 = arith.constant 0 : index
    %32 = vector.load %arg7[%c0_16, %c0_17] : memref<16x32xbf16, #tpu.memory_space<vmem>>, vector<16x32xbf16>
    tpu.vector_store %arg7[%c0_16, %c0_17], %31 {strides = array<i32>} : memref<16x32xbf16, #tpu.memory_space<vmem>>, vector<16x32xbf16>,
    return
  }
  func.func @transform_0(%arg0: i32) -> (i32, i32) {
    %c0_i32 = arith.constant 0 : i32
    %c0_i32_0 = arith.constant 0 : i32
    return %arg0, %c0_i32 : i32, i32
  }
  func.func @transform_1(%arg0: i32) -> (i32, i32) {
    %c0_i32 = arith.constant 0 : i32
    %c0_i32_0 = arith.constant 0 : i32
    %c0_i32_1 = arith.constant 0 : i32
    return %c0_i32, %c0_i32_0 : i32, i32
  }
  func.func @transform_2(%arg0: i32) -> (i32, i32) {
    %c0_i32 = arith.constant 0 : i32
    %c0_i32_0 = arith.constant 0 : i32
    %c0_i32_1 = arith.constant 0 : i32
    return %c0_i32, %c0_i32_0 : i32, i32
  }
  func.func @transform_3(%arg0: i32) -> (i32, i32) {
    %c0_i32 = arith.constant 0 : i32
    %c0_i32_0 = arith.constant 0 : i32
    return %arg0, %c0_i32 : i32, i32
  }
  func.func @transform_4(%arg0: i32) -> (i32, i32) {
    %c0_i32 = arith.constant 0 : i32
    %c0_i32_0 = arith.constant 0 : i32
    %c0_i32_1 = arith.constant 0 : i32
    return %c0_i32, %c0_i32_0 : i32, i32
  }
  func.func @transform_5(%arg0: i32) -> (i32, i32) {
    %c0_i32 = arith.constant 0 : i32
    %c0_i32_0 = arith.constant 0 : i32
    %c0_i32_1 = arith.constant 0 : i32
    return %c0_i32, %c0_i32_0 : i32, i32
  }
  func.func @transform_6(%arg0: i32) -> (i32, i32) {
    %c0_i32 = arith.constant 0 : i32
    %c0_i32_0 = arith.constant 0 : i32
    return %arg0, %c0_i32 : i32, i32
  }
}

module attributes {stable_mosaic.version = 11 : i64} {
  func.func @_qkv_kernel(%arg0: i32, %arg1: memref<16x32xbf16, #tpu.memory_space<vmem>>, %arg2: memref<32x96xbf16, #tpu.memory_space<vmem>>, %arg3: memref<1x96xf32, #tpu.memory_space<vmem>>, %arg4: memref<3x16x32xbf16, #tpu.memory_space<vmem>>) attributes {dimension_semantics = [#tpu.dimension_semantics<parallel>], iteration_bounds = array<i64: 1>, scalar_prefetch = 0 : i64, scratch_operands = 0 : i64, tpu.core_type = #tpu.core_type<tc>, window_params = [{transform_indices = @transform_0, window_bounds = array<i64: 16, 32>}, {pipeline_mode = #tpu.pipeline_mode<synchronous>, transform_indices = @transform_1, window_bounds = array<i64: 32, 96>}, {pipeline_mode = #tpu.pipeline_mode<synchronous>, transform_indices = @transform_2, window_bounds = array<i64: 1, 96>}, {transform_indices = @transform_3, window_bounds = array<i64: 3, 16, 32>}]} {
    %c0 = arith.constant 0 : index
    %c0_0 = arith.constant 0 : index
    %0 = vector.load %arg1[%c0, %c0_0] : memref<16x32xbf16, #tpu.memory_space<vmem>>, vector<16x32xbf16>
    %c0_1 = arith.constant 0 : index
    %c0_2 = arith.constant 0 : index
    %1 = vector.load %arg2[%c0_1, %c0_2] : memref<32x96xbf16, #tpu.memory_space<vmem>>, vector<32x96xbf16>
    %cst = arith.constant dense<0.000000e+00> : vector<16x96xf32>
    %2 = tpu.matmul %0, %1, %cst {dimension_numbers = #tpu.dot_dimension_numbers<[1], [0], [0], [1], [0, 0, 1, 1], [], []>} : vector<16x32xbf16>, vector<32x96xbf16>, vector<16x96xf32> -> vector<16x96xf32>
    %c0_3 = arith.constant 0 : index
    %c0_4 = arith.constant 0 : index
    %3 = vector.load %arg3[%c0_3, %c0_4] : memref<1x96xf32, #tpu.memory_space<vmem>>, vector<1x96xf32>
    %4 = vector.broadcast %3 : vector<1x96xf32> to vector<16x96xf32>
    %5 = arith.addf %2, %4 : vector<16x96xf32>
    %6 = arith.truncf %5 : vector<16x96xf32> to vector<16x96xbf16>
    %7 = vector.extract_strided_slice %6 {offsets = [0, 0], sizes = [16, 32], strides = [1, 1]} : vector<16x96xbf16> to vector<16x32xbf16>
    %c0_5 = arith.constant 0 : index
    %c0_6 = arith.constant 0 : index
    %c0_7 = arith.constant 0 : index
    %8 = vector.load %arg4[%c0_5, %c0_6, %c0_7] : memref<3x16x32xbf16, #tpu.memory_space<vmem>>, vector<1x16x32xbf16>
    %9 = vector.shape_cast %8 : vector<1x16x32xbf16> to vector<16x32xbf16>
    %10 = vector.shape_cast %7 : vector<16x32xbf16> to vector<1x16x32xbf16>
    tpu.vector_store %arg4[%c0_5, %c0_6, %c0_7], %10 {strides = array<i32>} : memref<3x16x32xbf16, #tpu.memory_space<vmem>>, vector<1x16x32xbf16>,
    %11 = vector.extract_strided_slice %6 {offsets = [0, 32], sizes = [16, 32], strides = [1, 1]} : vector<16x96xbf16> to vector<16x32xbf16>
    %c1 = arith.constant 1 : index
    %c0_8 = arith.constant 0 : index
    %c0_9 = arith.constant 0 : index
    %12 = vector.load %arg4[%c1, %c0_8, %c0_9] : memref<3x16x32xbf16, #tpu.memory_space<vmem>>, vector<1x16x32xbf16>
    %13 = vector.shape_cast %12 : vector<1x16x32xbf16> to vector<16x32xbf16>
    %14 = vector.shape_cast %11 : vector<16x32xbf16> to vector<1x16x32xbf16>
    tpu.vector_store %arg4[%c1, %c0_8, %c0_9], %14 {strides = array<i32>} : memref<3x16x32xbf16, #tpu.memory_space<vmem>>, vector<1x16x32xbf16>,
    %15 = vector.extract_strided_slice %6 {offsets = [0, 64], sizes = [16, 32], strides = [1, 1]} : vector<16x96xbf16> to vector<16x32xbf16>
    %c2 = arith.constant 2 : index
    %c0_10 = arith.constant 0 : index
    %c0_11 = arith.constant 0 : index
    %16 = vector.load %arg4[%c2, %c0_10, %c0_11] : memref<3x16x32xbf16, #tpu.memory_space<vmem>>, vector<1x16x32xbf16>
    %17 = vector.shape_cast %16 : vector<1x16x32xbf16> to vector<16x32xbf16>
    %18 = vector.shape_cast %15 : vector<16x32xbf16> to vector<1x16x32xbf16>
    tpu.vector_store %arg4[%c2, %c0_10, %c0_11], %18 {strides = array<i32>} : memref<3x16x32xbf16, #tpu.memory_space<vmem>>, vector<1x16x32xbf16>,
    return
  }
  func.func @transform_0(%arg0: i32) -> (i32, i32) {
    %c0_i32 = arith.constant 0 : i32
    %c0_i32_0 = arith.constant 0 : i32
    return %arg0, %c0_i32 : i32, i32
  }
  func.func @transform_1(%arg0: i32) -> (i32, i32) {
    %c0_i32 = arith.constant 0 : i32
    %c0_i32_0 = arith.constant 0 : i32
    %c0_i32_1 = arith.constant 0 : i32
    return %c0_i32, %c0_i32_0 : i32, i32
  }
  func.func @transform_2(%arg0: i32) -> (i32, i32) {
    %c0_i32 = arith.constant 0 : i32
    %c0_i32_0 = arith.constant 0 : i32
    %c0_i32_1 = arith.constant 0 : i32
    return %c0_i32, %c0_i32_0 : i32, i32
  }
  func.func @transform_3(%arg0: i32) -> (i32, i32, i32) {
    %c0_i32 = arith.constant 0 : i32
    %c0_i32_0 = arith.constant 0 : i32
    %c0_i32_1 = arith.constant 0 : i32
    return %c0_i32, %arg0, %c0_i32_0 : i32, i32, i32
  }
}

module attributes {stable_mosaic.version = 11 : i64} {
  func.func @_ffn_res_ln_kernel(%arg0: i32, %arg1: memref<16x32xbf16, #tpu.memory_space<vmem>>, %arg2: memref<32x64xbf16, #tpu.memory_space<vmem>>, %arg3: memref<1x64xf32, #tpu.memory_space<vmem>>, %arg4: memref<64x32xbf16, #tpu.memory_space<vmem>>, %arg5: memref<1x32xf32, #tpu.memory_space<vmem>>, %arg6: memref<1x32xf32, #tpu.memory_space<vmem>>, %arg7: memref<1x32xf32, #tpu.memory_space<vmem>>, %arg8: memref<16x32xbf16, #tpu.memory_space<vmem>>) attributes {dimension_semantics = [#tpu.dimension_semantics<parallel>], iteration_bounds = array<i64: 1>, scalar_prefetch = 0 : i64, scratch_operands = 0 : i64, tpu.core_type = #tpu.core_type<tc>, window_params = [{transform_indices = @transform_0, window_bounds = array<i64: 16, 32>}, {pipeline_mode = #tpu.pipeline_mode<synchronous>, transform_indices = @transform_1, window_bounds = array<i64: 32, 64>}, {pipeline_mode = #tpu.pipeline_mode<synchronous>, transform_indices = @transform_2, window_bounds = array<i64: 1, 64>}, {pipeline_mode = #tpu.pipeline_mode<synchronous>, transform_indices = @transform_3, window_bounds = array<i64: 64, 32>}, {pipeline_mode = #tpu.pipeline_mode<synchronous>, transform_indices = @transform_4, window_bounds = array<i64: 1, 32>}, {pipeline_mode = #tpu.pipeline_mode<synchronous>, transform_indices = @transform_5, window_bounds = array<i64: 1, 32>}, {pipeline_mode = #tpu.pipeline_mode<synchronous>, transform_indices = @transform_6, window_bounds = array<i64: 1, 32>}, {transform_indices = @transform_7, window_bounds = array<i64: 16, 32>}]} {
    %c0 = arith.constant 0 : index
    %c0_0 = arith.constant 0 : index
    %0 = vector.load %arg1[%c0, %c0_0] : memref<16x32xbf16, #tpu.memory_space<vmem>>, vector<16x32xbf16>
    %c0_1 = arith.constant 0 : index
    %c0_2 = arith.constant 0 : index
    %1 = vector.load %arg2[%c0_1, %c0_2] : memref<32x64xbf16, #tpu.memory_space<vmem>>, vector<32x64xbf16>
    %cst = arith.constant dense<0.000000e+00> : vector<16x64xf32>
    %2 = tpu.matmul %0, %1, %cst {dimension_numbers = #tpu.dot_dimension_numbers<[1], [0], [0], [1], [0, 0, 1, 1], [], []>} : vector<16x32xbf16>, vector<32x64xbf16>, vector<16x64xf32> -> vector<16x64xf32>
    %c0_3 = arith.constant 0 : index
    %c0_4 = arith.constant 0 : index
    %3 = vector.load %arg3[%c0_3, %c0_4] : memref<1x64xf32, #tpu.memory_space<vmem>>, vector<1x64xf32>
    %4 = vector.broadcast %3 : vector<1x64xf32> to vector<16x64xf32>
    %5 = arith.addf %2, %4 : vector<16x64xf32>
    %cst_5 = arith.constant 5.000000e-01 : f32
    %6 = vector.broadcast %cst_5 : f32 to vector<16x64xf32>
    %7 = arith.mulf %6, %5 : vector<16x64xf32>
    %cst_6 = arith.constant 0.707106769 : f32
    %8 = vector.broadcast %cst_6 : f32 to vector<16x64xf32>
    %9 = arith.mulf %5, %8 : vector<16x64xf32>
    %10 = math.erf %9 : vector<16x64xf32>
    %cst_7 = arith.constant 1.000000e+00 : f32
    %11 = vector.broadcast %cst_7 : f32 to vector<16x64xf32>
    %12 = arith.addf %11, %10 : vector<16x64xf32>
    %13 = arith.mulf %7, %12 : vector<16x64xf32>
    %14 = arith.truncf %13 : vector<16x64xf32> to vector<16x64xbf16>
    %c0_8 = arith.constant 0 : index
    %c0_9 = arith.constant 0 : index
    %15 = vector.load %arg4[%c0_8, %c0_9] : memref<64x32xbf16, #tpu.memory_space<vmem>>, vector<64x32xbf16>
    %cst_10 = arith.constant dense<0.000000e+00> : vector<16x32xf32>
    %16 = tpu.matmul %14, %15, %cst_10 {dimension_numbers = #tpu.dot_dimension_numbers<[1], [0], [0], [1], [0, 0, 1, 1], [], []>} : vector<16x64xbf16>, vector<64x32xbf16>, vector<16x32xf32> -> vector<16x32xf32>
    %c0_11 = arith.constant 0 : index
    %c0_12 = arith.constant 0 : index
    %17 = vector.load %arg5[%c0_11, %c0_12] : memref<1x32xf32, #tpu.memory_space<vmem>>, vector<1x32xf32>
    %18 = vector.broadcast %17 : vector<1x32xf32> to vector<16x32xf32>
    %19 = arith.addf %16, %18 : vector<16x32xf32>
    %20 = arith.extf %0 : vector<16x32xbf16> to vector<16x32xf32>
    %21 = arith.addf %19, %20 : vector<16x32xf32>
    %cst_13 = arith.constant dense<0.000000e+00> : vector<16xf32>
    %22 = vector.multi_reduction <add>, %21, %cst_13 [1] : vector<16x32xf32> to vector<16xf32>
    %23 = vector.shape_cast %22 : vector<16xf32> to vector<16x1xf32>
    %cst_14 = arith.constant 3.200000e+01 : f32
    %24 = vector.broadcast %cst_14 : f32 to vector<16x1xf32>
    %25 = arith.divf %23, %24 : vector<16x1xf32>
    %26 = vector.broadcast %25 : vector<16x1xf32> to vector<16x32xf32>
    %27 = arith.subf %21, %26 : vector<16x32xf32>
    %28 = arith.mulf %27, %27 : vector<16x32xf32>
    %cst_15 = arith.constant dense<0.000000e+00> : vector<16xf32>
    %29 = vector.multi_reduction <add>, %28, %cst_15 [1] : vector<16x32xf32> to vector<16xf32>
    %30 = vector.shape_cast %29 : vector<16xf32> to vector<16x1xf32>
    %cst_16 = arith.constant 3.200000e+01 : f32
    %31 = vector.broadcast %cst_16 : f32 to vector<16x1xf32>
    %32 = arith.divf %30, %31 : vector<16x1xf32>
    %cst_17 = arith.constant 9.99999996E-13 : f32
    %33 = vector.broadcast %cst_17 : f32 to vector<16x1xf32>
    %34 = arith.addf %32, %33 : vector<16x1xf32>
    %35 = math.rsqrt %34 : vector<16x1xf32>
    %36 = vector.broadcast %35 : vector<16x1xf32> to vector<16x32xf32>
    %37 = arith.mulf %27, %36 : vector<16x32xf32>
    %c0_18 = arith.constant 0 : index
    %c0_19 = arith.constant 0 : index
    %38 = vector.load %arg6[%c0_18, %c0_19] : memref<1x32xf32, #tpu.memory_space<vmem>>, vector<1x32xf32>
    %39 = vector.broadcast %38 : vector<1x32xf32> to vector<16x32xf32>
    %40 = arith.mulf %37, %39 : vector<16x32xf32>
    %c0_20 = arith.constant 0 : index
    %c0_21 = arith.constant 0 : index
    %41 = vector.load %arg7[%c0_20, %c0_21] : memref<1x32xf32, #tpu.memory_space<vmem>>, vector<1x32xf32>
    %42 = vector.broadcast %41 : vector<1x32xf32> to vector<16x32xf32>
    %43 = arith.addf %40, %42 : vector<16x32xf32>
    %44 = arith.truncf %43 : vector<16x32xf32> to vector<16x32xbf16>
    %c0_22 = arith.constant 0 : index
    %c0_23 = arith.constant 0 : index
    %45 = vector.load %arg8[%c0_22, %c0_23] : memref<16x32xbf16, #tpu.memory_space<vmem>>, vector<16x32xbf16>
    tpu.vector_store %arg8[%c0_22, %c0_23], %44 {strides = array<i32>} : memref<16x32xbf16, #tpu.memory_space<vmem>>, vector<16x32xbf16>,
    return
  }
  func.func @transform_0(%arg0: i32) -> (i32, i32) {
    %c0_i32 = arith.constant 0 : i32
    %c0_i32_0 = arith.constant 0 : i32
    return %arg0, %c0_i32 : i32, i32
  }
  func.func @transform_1(%arg0: i32) -> (i32, i32) {
    %c0_i32 = arith.constant 0 : i32
    %c0_i32_0 = arith.constant 0 : i32
    %c0_i32_1 = arith.constant 0 : i32
    return %c0_i32, %c0_i32_0 : i32, i32
  }
  func.func @transform_2(%arg0: i32) -> (i32, i32) {
    %c0_i32 = arith.constant 0 : i32
    %c0_i32_0 = arith.constant 0 : i32
    %c0_i32_1 = arith.constant 0 : i32
    return %c0_i32, %c0_i32_0 : i32, i32
  }
  func.func @transform_3(%arg0: i32) -> (i32, i32) {
    %c0_i32 = arith.constant 0 : i32
    %c0_i32_0 = arith.constant 0 : i32
    %c0_i32_1 = arith.constant 0 : i32
    return %c0_i32, %c0_i32_0 : i32, i32
  }
  func.func @transform_4(%arg0: i32) -> (i32, i32) {
    %c0_i32 = arith.constant 0 : i32
    %c0_i32_0 = arith.constant 0 : i32
    %c0_i32_1 = arith.constant 0 : i32
    return %c0_i32, %c0_i32_0 : i32, i32
  }
  func.func @transform_5(%arg0: i32) -> (i32, i32) {
    %c0_i32 = arith.constant 0 : i32
    %c0_i32_0 = arith.constant 0 : i32
    %c0_i32_1 = arith.constant 0 : i32
    return %c0_i32, %c0_i32_0 : i32, i32
  }
  func.func @transform_6(%arg0: i32) -> (i32, i32) {
    %c0_i32 = arith.constant 0 : i32
    %c0_i32_0 = arith.constant 0 : i32
    %c0_i32_1 = arith.constant 0 : i32
    return %c0_i32, %c0_i32_0 : i32, i32
  }
  func.func @transform_7(%arg0: i32) -> (i32, i32) {
    %c0_i32 = arith.constant 0 : i32
    %c0_i32_0 = arith.constant 0 : i32
    return %arg0, %c0_i32 : i32, i32
  }
}

</mosaic_0001>

<bundles_post_ra>
// kernel: bert_encoder_tucker_vertical.8
= control target key start
LH: loop header
LB: loop body
LE: loop exit
PB: predicated region body
PF: predicated region fallthrough
CT: control target
= control target key end

     0   :  { %v154_v0 = vmov 0.0   ;;  %vm155_vm0 = vmmov 0   ;;  %vm45_vm1 = vcmask 261120   ;;  %vm98_vm2 = vcmask 257024   ;;  %s157_s21 = smov 96   ;;  %s214_s1 = inlined_call_operand.vmem [shape: bf16[32,96], index: 1, kind: input, shape index: {}]   ;;  %s215_s0 = inlined_call_operand.vmem [shape: bf16[16,32], index: 0, kind: input, shape index: {}]   ;;  %s216_s2 = inlined_call_operand.vmem [shape: f32[1,96], index: 2, kind: input, shape index: {}]   ;;  %s217_s3 = inlined_call_operand.vmem [shape: bf16[3,16,32], index: 3, kind: output, shape index: {}]  }
   0x1   :  { %139 = vmatprep.subr.bf16.mxu0 %v154_v0  ;;  %v151_v1 = vld [vmem:[%s214_s1 + $0x8] sm:$0xff]   ;;  %143 = vmatprep.mubr.msk.bf16.mxu0 %vm155_vm0, %v154_v0  ;;  %v152_v2 = vld [vmem:[%s214_s1] sm:$0xff]  }
   0x2   :  { %140 = vmatpush3.bf16.msra.mxu0 %v151_v1  ;;  %v153_v3 = vld [vmem:[%s215_s0] sm:$0xff]   ;;  %s156_s0 = smov 64  }
   0x3   :  { %141 = vmatprep.subr.bf16.mxu0 %v154_v0  ;;  %v123_v4 = vld [vmem:[%s216_s2] ss:$0 sm:$0xff] }
   0x6   :  { %142 = vmatpush3.bf16.msra.mxu0 %v152_v2 }
   0x9   :  { %144 = vmatmul.mubr.msk.bf16.vlgmr.msra.gmra.mxu0 %vm45_vm1, %v153_v3 }
  0xc9   :  { %v83_v5 = vpop.f32.mrf.mxu0 }
  0xca   :  { %v84_v6 = vadd.f32 %v123_v4, %v83_v5 }
  0xcb   :  { %v145_v7 = vpop.f32.mrf.mxu0 }
  0xcc   :  { %v134_v8 = vpack.c.bf16 %v84_v6, %v84_v6 }
  0xcd   :  { %v86_v9 = vpop.f32.mrf.mxu0 }
  0xce   :  { %99 = vst.msk [vmem:[%s217_s3] sm:$0xf] %vm98_vm2, %v134_v8  ;;  %v87_v10 = vadd.f32 %v123_v4, %v86_v9  ;;  %110 = vrot.lane.b32.xlu1 %v134_v8, %s156_s0  ;;  %101 = vrot.lane.b32.xlu0 %v134_v8, %s157_s21 }
  0xcf   :  { %v146_v11 = vpop.f32.mrf.mxu0 }
  0xd0   :  { %v135_v12 = vpack.c.bf16 %v87_v10, %v87_v10 }
  0xd2   :  { %100 = vst.msk [vmem:[%s217_s3 + $0x4] sm:$0xf] %vm98_vm2, %v135_v12  ;;  %112 = vrot.lane.b32.xlu1 %v135_v12, %s156_s0  ;;  %103 = vrot.lane.b32.xlu0 %v135_v12, %s157_s21 }
 0x140   :  { %v111_v13 = vpop.permute.xlu1 %110  ;;  %v102_v14 = vpop.permute.xlu0 %101 }
 0x141   :  { %132 = vst.msk [vmem:[%s217_s3 + $0x10] sm:$0xf] %vm98_vm2, %v111_v13  ;;  %130 = vst.msk [vmem:[%s217_s3 + $0x8] sm:$0xf] %vm98_vm2, %v102_v14 }
 0x144   :  { %v113_v15 = vpop.permute.xlu1 %112  ;;  %v104_v16 = vpop.permute.xlu0 %103 }
 0x145   :  { %133 = vst.msk [vmem:[%s217_s3 + $0x14] sm:$0xf] %vm98_vm2, %v113_v15  ;;  %131 = vst.msk [vmem:[%s217_s3 + $0xc] sm:$0xf] %vm98_vm2, %v104_v16 }

// kernel: bert_encoder_tucker_vertical.10
= control target key start
LH: loop header
LB: loop body
LE: loop exit
PB: predicated region body
PF: predicated region fallthrough
CT: control target
= control target key end

     0   :  { %v200_v0 = vmov 0.0   ;;  %vm201_vm0 = vmmov 0   ;;  %vm54_vm1 = vcmask 261120   ;;  %vm158_vm2 = vcmask 257024   ;;  %s269_s1 = inlined_call_operand.vmem [shape: bf16[32,32], index: 1, kind: input, shape index: {}]   ;;  %s270_s0 = inlined_call_operand.vmem [shape: bf16[16,32], index: 0, kind: input, shape index: {}]   ;;  %s271_s3 = inlined_call_operand.vmem [shape: bf16[16,32], index: 3, kind: input, shape index: {}]   ;;  %s272_s2 = inlined_call_operand.vmem [shape: f32[1,32], index: 2, kind: input, shape index: {}]   ;;  %s273_s4 = inlined_call_operand.vmem [shape: f32[1,32], index: 4, kind: input, shape index: {}]   ;;  %s274_s5 = inlined_call_operand.vmem [shape: f32[1,32], index: 5, kind: input, shape index: {}]   ;;  %s275_s6 = inlined_call_operand.vmem [shape: bf16[16,32], index: 6, kind: output, shape index: {}]  }
   0x1   :  { %183 = vmatprep.subr.bf16.mxu0 %v200_v0  ;;  %v193_v1 = vld [vmem:[%s269_s1 + $0x8] sm:$0xff]   ;;  %187 = vmatprep.mubr.msk.bf16.mxu0 %vm201_vm0, %v200_v0  ;;  %v194_v2 = vld [vmem:[%s269_s1] sm:$0xff]  }
   0x2   :  { %184 = vmatpush3.bf16.msra.mxu0 %v193_v1  ;;  %v195_v3 = vld [vmem:[%s270_s0] sm:$0xff]  }
   0x3   :  { %185 = vmatprep.subr.bf16.mxu0 %v200_v0  ;;  %v177_v4 = vld [vmem:[%s271_s3] sm:$0xff]  }
   0x4   :  { %v165_v5 = vld [vmem:[%s272_s2] ss:$0 sm:$0xff]  ;;  %v178_v6 = vunpack.c.l.bf16 %v177_v4  ;;  %v179_v11 = vunpack.c.h.bf16 %v177_v4 }
   0x5   :  { %v170_v35 = vld [vmem:[%s273_s4] ss:$0 sm:$0xff] }
   0x6   :  { %186 = vmatpush3.bf16.msra.mxu0 %v194_v2  ;;  %v171_v37 = vld [vmem:[%s274_s5] ss:$0 sm:$0xff] }
   0x9   :  { %188 = vmatmul.mubr.msk.bf16.vlgmr.msra.gmra.mxu0 %vm54_vm1, %v195_v3 }
  0xc9   :  { %v92_v7 = vpop.f32.mrf.mxu0 }
  0xca   :  { %v93_v8 = vadd.f32 %v165_v5, %v92_v7 }
  0xcb   :  { %v189_v9 = vpop.f32.mrf.mxu0 }
  0xcc   :  { %v103_v10 = vadd.f32 %v178_v6, %v93_v8 }
  0xcd   :  { %v95_v12 = vpop.f32.mrf.mxu0 }
  0xce   :  { %v96_v13 = vadd.f32 %v165_v5, %v95_v12  ;;  %v105_v14 = vsel %vm54_vm1, %v103_v10, 0.0 }
  0xcf   :  { %106 = vadd.xlane.f32.xlu0 %v105_v14  ;;  %v190_v15 = vpop.f32.mrf.mxu0 }
  0xd0   :  { %v104_v16 = vadd.f32 %v179_v11, %v96_v13 }
  0xd2   :  { %v108_v17 = vsel %vm54_vm1, %v104_v16, 0.0 }
  0xd3   :  { %109 = vadd.xlane.f32.xlu0 %v108_v17 }
 0x158   :  { %v107_v18 = vpop.xlane.xlu0 %106 }
 0x159   :  { %v112_v19 = vmul.f32 0.03125, %v107_v18 }
 0x15b   :  { %v114_v20 = vsub.f32 %v103_v10, %v112_v19 }
 0x15c   :  { %v110_v21 = vpop.xlane.xlu0 %109 }
 0x15d   :  { %v113_v22 = vmul.f32 0.03125, %v110_v21  ;;  %v116_v23 = vmul.f32 %v114_v20, %v114_v20 }
 0x15f   :  { %v115_v24 = vsub.f32 %v104_v16, %v113_v22  ;;  %v118_v25 = vsel %vm54_vm1, %v116_v23, 0.0 }
 0x160   :  { %119 = vadd.xlane.f32.xlu1 %v118_v25 }
 0x161   :  { %v117_v26 = vmul.f32 %v115_v24, %v115_v24 }
 0x163   :  { %v121_v27 = vsel %vm54_vm1, %v117_v26, 0.0 }
 0x164   :  { %122 = vadd.xlane.f32.xlu1 %v121_v27 }
 0x1e9   :  { %v120_v28 = vpop.xlane.xlu1 %119 }
 0x1ea   :  { %v124_v29 = vmul.f32 0.03125, %v120_v28 }
 0x1ec   :  { %v126_v30 = vadd.f32 1e-12, %v124_v29 }
 0x1ed   :  { %v123_v31 = vpop.xlane.xlu1 %122 }
 0x1ee   :  { %196 = vrsqrt.f32 %v126_v30  ;;  %v125_v32 = vmul.f32 0.03125, %v123_v31 }
 0x1f0   :  { %v127_v33 = vadd.f32 1e-12, %v125_v32 }
 0x1f2   :  { %198 = vrsqrt.f32 %v127_v33 }
 0x1fb   :  { %v197_v34 = vpop.eup %196 }
 0x1fc   :  { %v130_v36 = vmul.f32 %v197_v34, %v114_v20 }
 0x1fe   :  { %v139_v38 = vmul.f32 %v170_v35, %v130_v36 }
 0x1ff   :  { %v199_v39 = vpop.eup %198 }
 0x200   :  { %v148_v40 = vadd.f32 %v171_v37, %v139_v38  ;;  %v131_v41 = vmul.f32 %v199_v39, %v115_v24 }
 0x202   :  { %v174_v42 = vpack.c.bf16 %v148_v40, %v148_v40  ;;  %v140_v43 = vmul.f32 %v170_v35, %v131_v41 }
 0x204   :  { %159 = vst.msk [vmem:[%s275_s6] sm:$0xf] %vm158_vm2, %v174_v42  ;;  %v149_v44 = vadd.f32 %v171_v37, %v140_v43 }
 0x206   :  { %v175_v45 = vpack.c.bf16 %v149_v44, %v149_v44 }
 0x208   :  { %160 = vst.msk [vmem:[%s275_s6 + $0x4] sm:$0xf] %vm158_vm2, %v175_v45 }

// kernel: bert_encoder_tucker_vertical.11
= control target key start
LH: loop header
LB: loop body
LE: loop exit
PB: predicated region body
PF: predicated region fallthrough
CT: control target
= control target key end

     0   :  { %v324_v0 = vmov 0.0   ;;  %vm325_vm0 = vmmov 0   ;;  %vm57_vm1 = vcmask 261120   ;;  %vm152_vm2 = vcmask 523264   ;;  %s410_s1 = inlined_call_operand.vmem [shape: bf16[32,64], index: 1, kind: input, shape index: {}]   ;;  %s411_s0 = inlined_call_operand.vmem [shape: bf16[16,32], index: 0, kind: input, shape index: {}]   ;;  %s412_s3 = inlined_call_operand.vmem [shape: bf16[64,32], index: 3, kind: input, shape index: {}]   ;;  %s413_s2 = inlined_call_operand.vmem [shape: f32[1,64], index: 2, kind: input, shape index: {}]   ;;  %s414_s4 = inlined_call_operand.vmem [shape: f32[1,32], index: 4, kind: input, shape index: {}]   ;;  %s415_s5 = inlined_call_operand.vmem [shape: f32[1,32], index: 5, kind: input, shape index: {}]   ;;  %s416_s6 = inlined_call_operand.vmem [shape: f32[1,32], index: 6, kind: input, shape index: {}]   ;;  %s417_s7 = inlined_call_operand.vmem [shape: bf16[16,32], index: 7, kind: output, shape index: {}]  }
   0x1   :  { %286 = vmatprep.subr.bf16.mxu0 %v324_v0  ;;  %v308_v1 = vld [vmem:[%s410_s1 + $0x8] sm:$0xff]   ;;  %290 = vmatprep.mubr.msk.bf16.mxu0 %vm325_vm0, %v324_v0  ;;  %v309_v2 = vld [vmem:[%s410_s1] sm:$0xff]   ;;  %v311_v4 = vld [vmem:[%s412_s3 + $0x18] sm:$0xff]   ;;  %vm254_vm3 = vcmask 257024  }
   0x2   :  { %294 = vmatprep.subr.bf16.mxu1 %v324_v0  ;;  %302 = vmatprep.mubr.msk.bf16.mxu1 %vm325_vm0, %v324_v0  ;;  %v27_v3 = vld [vmem:[%s411_s0] sm:$0xff]   ;;  %v312_v5 = vld [vmem:[%s412_s3 + $0x10] sm:$0xff]   ;;  %v313_v6 = vld [vmem:[%s412_s3 + $0x8] sm:$0xff]  }
   0x3   :  { %287 = vmatpush3.bf16.msra.mxu0 %v308_v1  ;;  %295 = vmatpush3.bf16.msra.mxu1 %v311_v4  ;;  %v314_v7 = vld [vmem:[%s412_s3] sm:$0xff]   ;;  %v197_v27 = vunpack.c.l.bf16 %v27_v3  ;;  %v198_v32 = vunpack.c.h.bf16 %v27_v3 }
   0x4   :  { %288 = vmatprep.subr.bf16.mxu0 %v324_v0  ;;  %296 = vmatprep.subr.bf16.mxu1 %v324_v0  ;;  %v261_v8 = vld [vmem:[%s413_s2] ss:$0 sm:$0xff] }
   0x5   :  { %v266_v26 = vld [vmem:[%s414_s4] ss:$0 sm:$0xff] }
   0x6   :  { %v272_v56 = vld [vmem:[%s415_s5] ss:$0 sm:$0xff] }
   0x7   :  { %289 = vmatpush3.bf16.msra.mxu0 %v309_v2  ;;  %297 = vmatpush3.bf16.msra.mxu1 %v312_v5  ;;  %v273_v58 = vld [vmem:[%s416_s6] ss:$0 sm:$0xff] }
   0x8   :  { %298 = vmatprep.subr.bf16.mxu1 %v324_v0 }
   0xa   :  { %291 = vmatmul.mubr.msk.bf16.vlgmr.msra.gmra.mxu0 %vm57_vm1, %v27_v3 }
   0xb   :  { %299 = vmatpush3.bf16.msra.mxu1 %v313_v6 }
   0xc   :  { %300 = vmatprep.subr.bf16.mxu1 %v324_v0 }
   0xf   :  { %301 = vmatpush3.bf16.msra.mxu1 %v314_v7 }
  0xca   :  { %v95_v9 = vpop.f32.mrf.mxu0 }
  0xcb   :  { %v96_v10 = vadd.f32 %v261_v8, %v95_v9 }
  0xcc   :  { %v292_v11 = vpop.f32.mrf.mxu0 }
  0xcd   :  { %v104_v12 = vmul.f32 0.70710677, %v96_v10  ;;  %v102_v20 = vmul.f32 0.5, %v96_v10 }
  0xce   :  { %v98_v13 = vpop.f32.mrf.mxu0 }
  0xcf   :  { %316 = verf.f32 %v104_v12  ;;  %v99_v14 = vadd.f32 %v261_v8, %v98_v13 }
  0xd0   :  { %v293_v15 = vpop.f32.mrf.mxu0 }
  0xd1   :  { %v105_v16 = vmul.f32 0.70710677, %v99_v14  ;;  %v103_v21 = vmul.f32 0.5, %v99_v14 }
  0xd3   :  { %318 = verf.f32 %v105_v16 }
  0xdc   :  { %v317_v17 = vpop.eup %316 }
  0xdd   :  { %v108_v18 = vadd.f32 1.0, %v317_v17 }
  0xdf   :  { %v110_v23 = vmul.f32 %v108_v18, %v102_v20 }
  0xe0   :  { %v319_v19 = vpop.eup %318 }
  0xe1   :  { %v109_v22 = vadd.f32 1.0, %v319_v19 }
  0xe3   :  { %v111_v24 = vmul.f32 %v109_v22, %v103_v21 }
  0xe5   :  { %v112_v25 = vpack.c.bf16 %v111_v24, %v110_v23 }
  0xe7   :  { %303 = vmatmul.mubr.msk.bf16.vlgmr.msra.gmra.mxu1 %vm152_vm2, %v112_v25 }
 0x1a7   :  { %v190_v28 = vpop.f32.mrf.mxu1 }
 0x1a8   :  { %v191_v29 = vadd.f32 %v266_v26, %v190_v28 }
 0x1a9   :  { %v304_v30 = vpop.f32.mrf.mxu1 }
 0x1aa   :  { %v199_v31 = vadd.f32 %v197_v27, %v191_v29 }
 0x1ab   :  { %v193_v33 = vpop.f32.mrf.mxu1 }
 0x1ac   :  { %v194_v34 = vadd.f32 %v266_v26, %v193_v33  ;;  %v201_v35 = vsel %vm57_vm1, %v199_v31, 0.0 }
 0x1ad   :  { %202 = vadd.xlane.f32.xlu0 %v201_v35  ;;  %v305_v36 = vpop.f32.mrf.mxu1 }
 0x1ae   :  { %v200_v37 = vadd.f32 %v198_v32, %v194_v34 }
 0x1b0   :  { %v204_v38 = vsel %vm57_vm1, %v200_v37, 0.0 }
 0x1b1   :  { %205 = vadd.xlane.f32.xlu0 %v204_v38 }
 0x236   :  { %v203_v39 = vpop.xlane.xlu0 %202 }
 0x237   :  { %v208_v40 = vmul.f32 0.03125, %v203_v39 }
 0x239   :  { %v210_v41 = vsub.f32 %v199_v31, %v208_v40 }
 0x23a   :  { %v206_v42 = vpop.xlane.xlu0 %205 }
 0x23b   :  { %v209_v43 = vmul.f32 0.03125, %v206_v42  ;;  %v212_v44 = vmul.f32 %v210_v41, %v210_v41 }
 0x23d   :  { %v211_v45 = vsub.f32 %v200_v37, %v209_v43  ;;  %v214_v46 = vsel %vm57_vm1, %v212_v44, 0.0 }
 0x23e   :  { %215 = vadd.xlane.f32.xlu1 %v214_v46 }
 0x23f   :  { %v213_v47 = vmul.f32 %v211_v45, %v211_v45 }
 0x241   :  { %v217_v48 = vsel %vm57_vm1, %v213_v47, 0.0 }
 0x242   :  { %218 = vadd.xlane.f32.xlu1 %v217_v48 }
 0x2c7   :  { %v216_v49 = vpop.xlane.xlu1 %215 }
 0x2c8   :  { %v220_v50 = vmul.f32 0.03125, %v216_v49 }
 0x2ca   :  { %v222_v51 = vadd.f32 1e-12, %v220_v50 }
 0x2cb   :  { %v219_v52 = vpop.xlane.xlu1 %218 }
 0x2cc   :  { %320 = vrsqrt.f32 %v222_v51  ;;  %v221_v53 = vmul.f32 0.03125, %v219_v52 }
 0x2ce   :  { %v223_v54 = vadd.f32 1e-12, %v221_v53 }
 0x2d0   :  { %322 = vrsqrt.f32 %v223_v54 }
 0x2d9   :  { %v321_v55 = vpop.eup %320 }
 0x2da   :  { %v226_v57 = vmul.f32 %v321_v55, %v210_v41 }
 0x2dc   :  { %v235_v59 = vmul.f32 %v272_v56, %v226_v57 }
 0x2dd   :  { %v323_v60 = vpop.eup %322 }
 0x2de   :  { %v244_v61 = vadd.f32 %v273_v58, %v235_v59  ;;  %v227_v62 = vmul.f32 %v323_v60, %v211_v45 }
 0x2e0   :  { %v276_v63 = vpack.c.bf16 %v244_v61, %v244_v61  ;;  %v236_v0 = vmul.f32 %v272_v56, %v227_v62 }
 0x2e2   :  { %255 = vst.msk [vmem:[%s417_s7] sm:$0xf] %vm254_vm3, %v276_v63  ;;  %v245_v1 = vadd.f32 %v273_v58, %v236_v0 }
 0x2e4   :  { %v277_v2 = vpack.c.bf16 %v245_v1, %v245_v1 }
 0x2e6   :  { %256 = vst.msk [vmem:[%s417_s7 + $0x4] sm:$0xf] %vm254_vm3, %v277_v2 }

// kernel: bert_encoder_tucker_vertical.9
= control target key start
LH: loop header
LB: loop body
LE: loop exit
PB: predicated region body
PF: predicated region fallthrough
CT: control target
= control target key end

     0   :  { %s1014_s9 = smov 0   ;;  %s1016_s10 = smov 0   ;;  %s1164_s0 = inlined_call_operand.vmem [shape: bf16[3,2,8,32], index: 0, kind: input, shape index: {}]   ;;  %s1165_s1 = inlined_call_operand.vmem [shape: f32[2,1,8], index: 1, kind: input, shape index: {}]   ;;  %s1166_s2 = inlined_call_operand.vmem [shape: bf16[2,8,32], index: 2, kind: output, shape index: {}]  }
   0x1   :  { %s1018_s11 = smov 0   ;;  %s1020_s12 = smov 0  }
   0x2   :  { %s1022_s13 = smov 0  }
   0x3 LB: > { %s24_s14 = sadd.s32 1, %s985_s12  ;;  %p40_p1 = scmp.ne.s32.totalorder %s977_s10, %s973_s9  ;;  %s989_s13 = sphi %s1022_s13, %s12_s13   ;;  %s985_s12 = sphi %s1020_s12, %s1170_s12   ;;  %s981_s11 = sphi %s1018_s11, %s1169_s11   ;;  %s977_s10 = sphi %s1016_s10, %s1168_s10   ;;  %s973_s9 = sphi %s1014_s9, %s1167_s9  }
   0x4   : > { %p26_p0 = scmp.ge.s32.totalorder %s24_s14, 2  ;;  %p41_p2 = scmp.eq.s32.totalorder %s989_s13, 0 }
   0x5   : > { %s33_s16 = sadd.s32 1, %s977_s10  ;;  %p798_p5 = scmp.ge.s32.totalorder %s989_s13, 2 }
   0x6   : > { %s1172_s14 = smov (%p26_p0, %s24_s14), 0  ;;  %p42_p3 = por %p41_p2, %p40_p1 }
   0x7   : > { %s28_s15 = ssub.s32 %s985_s12, %s1172_s14  ;;  %120 = sbr.rel (%p798_p5) target bundleno = 19 (0x13), region = 16 }
   0x8   : > { %p31_p4 = scmp.eq.s32.totalorder %s28_s15, 0 }
   0xa   : > { %s1049_s17 = scalar_select %p31_p4, %s977_s10, %s33_s16  }
   0xc   : > { %123 = sbr.rel (!%p42_p3) target bundleno = 19 (0x13), region = 20  ;;  %s125_s18 = sand.u32 (%p42_p3), 1, %s977_s10  }
   0xd   : > { %s799_s19 = sshll.u32 (%p42_p3), %s985_s12, 2  ;;  %s882_s20 = smul.u32 (%p42_p3), 12, %s125_s18 }
   0xe   : > { %s130_s23 = scalar_lea.vmem (%p42_p3), %s1164_s0, %s799_s19 }
   0xf   : > { %v147_v0 = vld [vmem:[%s130_s23] sm:$0xf] (%p42_p3)  ;;  %v149_v1 = vld [vmem:[%s130_s23 + $0x8] sm:$0xf] (%p42_p3)  ;;  %v151_v2 = vld [vmem:[%s130_s23 + $0x10] sm:$0xf] (%p42_p3) }
  0x10   : > { %s127_s24 = scalar_lea.vmem (%p42_p3), [#allocation2], %s882_s20 }
  0x11   : > { %148 = vst [vmem:[%s127_s24] sm:$0xf] %v147_v0  ;;  %150 = vst [vmem:[%s127_s24 + $0x4] sm:$0xf] %v149_v1 }
  0x12   : > { %152 = vst [vmem:[%s127_s24 + $0x8] sm:$0xf] %v151_v2 }
  0x13 PF: > { %p800_p6 = scmp.ge.s32.totalorder %s989_s13, 1  ;;  %p187_p7 = scmp.lt.s32.totalorder %s989_s13, 3 }
  0x15   : > { %p188_p8 = pnand %p800_p6, %p187_p7 }
  0x16   : > { %s194_s25 = sand.u32 (!%p188_p8), 1, %s973_s9   ;;  %p220_p9 = scmp.lt.s32.totalorder (!%p188_p8), %s981_s11, 1 }
  0x17   : > { %191 = sbr.rel (%p188_p8) target bundleno = 1429 (0x595), region = 65  ;;  %s993_s3 = smov (!%p188_p8), 120  }
  0x18   : > { %s883_s26 = smul.u32 (!%p188_p8), 12, %s194_s25  ;;  %s994_s4 = smov (!%p188_p8), 112  }
  0x19   : > { %s995_s5 = smov (!%p188_p8), 104   ;;  %s996_s6 = smov (!%p188_p8), 8  }
  0x1a   : > { %s1066_s27 = scalar_lea.vmem (!%p188_p8), [#allocation2], %s883_s26  ;;  %s997_s7 = smov (!%p188_p8), 16  }
  0x1b   : > { %s998_s8 = smov (!%p188_p8), 24  }
  0x1c   : > { %v991_v3 = vmov 0.0   ;;  %vm992_vm0 = vmmov 0   ;;  %vm243_vm1 = vcmask 64512   ;;  %v802_v4 = vld [vmem:[%s1066_s27 + $0x4] sm:$0xf]  ;;  %s1174_s11 = smov (!%p220_p9, %s981_s11), 1 }
  0x1d   : > { %834 = vmatprep.subr.bf16.mxu0 %v991_v3  ;;  %836 = vmatprep.mubr.msk.bf16.mxu0 %vm992_vm0, %v991_v3  ;;  %v248_v5 = vsel %vm243_vm1, %v802_v4, 0  ;;  %v232_v6 = vld [vmem:[%s1066_s27] sm:$0xf]  ;;  %s222_s30 = scalar_lea.vmem %s1165_s1, %s1174_s11  ;;  %v808_v14 = vcombine.low %v802_v4, %v802_v4  ;;  %v1094_v21 = vld [vmem:[%s1066_s27 + $0x8] sm:$0xf]  ;;  %vm305_vm2 = vcmask 1043456  }
  0x1e   : > { %840 = vmatprep.subr.bf16.mxu1 %v991_v3  ;;  %842 = vmatprep.mubr.msk.bf16.mxu1 %vm992_vm0, %v991_v3  ;;  %v1083_v7 = vld [vmem:[%s222_s30] ss:$0 sm:$0xff]  ;;  %v807_v15 = vcombine.low %v232_v6, %v232_v6  ;;  %v307_v22 = vsel %vm305_vm2, %v1094_v21, 0  ;;  %vm701_vm3 = vcmask 130048   ;;  %s801_s9 = sshll.u32 %s1174_s11, 2  ;;  %vm703_vm4 = vcmask 195584  }
  0x1f   : > { %835 = vmatpush3.bf16.xpose.msra.mxu0 %v248_v5  ;;  %357 = vrot.lane.b32.xlu1 %v808_v14, %s993_s3  ;;  %v810_v5 = vcombine.low %v1094_v21, %v1094_v21  ;;  %s229_s18 = scalar_lea.vmem %s1166_s2, %s801_s9  ;;  %vm706_vm5 = vcmask 257024  }
  0x20   : > { %852 = vmatprep.subr.bf16.mxu0 %v991_v3  ;;  %841 = vmatpush3.bf16.msra.mxu1 %v307_v22 }
  0x21   : > { %846 = vmatprep.subr.bf16.mxu1 %v991_v3 }
  0x23   : > { %352 = vrot.lane.b32.xlu1 %v807_v15, %s993_s3 }
  0x26   : > { %837 = vmatmul.mubr.msk.bf16.vlgmr.msra.gmra.mxu0 %vm243_vm1, %v232_v6 }
  0x27   : > { %854 = vmatprep.mubr.msk.bf16.mxu0 %vm992_vm0, %v991_v3  ;;  %468 = vrot.lane.b32.xlu1 %v807_v15, %s994_s4 }
  0x2b   : > { %580 = vrot.lane.b32.xlu1 %v808_v14, %s995_s5 }
  0x2f   : > { %578 = vrot.lane.b32.xlu1 %v807_v15, %s995_s5 }
  0x91   : > { %v358_v25 = vpop.permute.xlu1 %357 }
  0x92   : > { %v363_v27 = vsel %vm243_vm1, %v358_v25, 0 }
  0x95   : > { %v353_v29 = vpop.permute.xlu1 %352 }
  0x99   : > { %v469_v31 = vpop.permute.xlu1 %468 }
  0x9d   : > { %v581_v33 = vpop.permute.xlu1 %580 }
  0x9e   : > { %v586_v34 = vsel %vm243_vm1, %v581_v33, 0 }
  0xa1   : > { %v579_v35 = vpop.permute.xlu1 %578 }
  0xe6   : > { %v284_v8 = vpop.f32.mrf.mxu0 }
  0xe7   : > { %v285_v9 = vadd.f32 %v1083_v7, %v284_v8 }
  0xe8   : > { %v838_v10 = vpop.f32.mrf.mxu0 }
  0xe9   : > { %v290_v11 = vsel %vm243_vm1, %v285_v9, -inf }
  0xea   : > { %291 = vmax.xlane.f32.xlu0 %v290_v11  ;;  %v287_v12 = vpop.f32.mrf.mxu0 }
  0xec   : > { %v839_v13 = vpop.f32.mrf.mxu0 }
 0x173   : > { %v292_v16 = vpop.xlane.xlu0 %291 }
 0x174   : > { %v293_v17 = vsub.f32 %v285_v9, %v292_v16 }
 0x176   : > { %v294_v18 = vmul.f32 1.442695, %v293_v17 }
 0x178   : > { %935 = vpow2.f32 %v294_v18 }
 0x185   : > { %v936_v19 = vpop.eup %935 }
 0x186   : > { %v296_v20 = vsel %vm243_vm1, %v936_v19, 0.0 }
 0x187   : > { %297 = vadd.xlane.f32.xlu0 %v296_v20 }
 0x19d   : > { %470 = vrot.lane.b32.xlu0 %v808_v14, %s994_s4 }
 0x210   : > { %v298_v23 = vpop.xlane.xlu0 %297 }
 0x211   : > { %937 = vrcp.f32 %v298_v23 }
 0x214   : > { %v471_v30 = vpop.permute.xlu0 %470 }
 0x215   : > { %v476_v32 = vsel %vm243_vm1, %v471_v30, 0 }
 0x21e   : > { %v938_v24 = vpop.eup %937 }
 0x21f   : > { %v300_v26 = vmul.f32 %v938_v24, %v936_v19 }
 0x221   : > { %v301_v28 = vpack.c.bf16 %v300_v26, %v300_v26 }
 0x223   : > { %843 = vmatmul.mubr.msk.bf16.vlgmr.msra.gmra.mxu1 %vm243_vm1, %v301_v28 }
 0x224   : > { %847 = vmatpush3.bf16.xpose.msra.mxu1 %v363_v27  ;;  %848 = vmatprep.mubr.msk.bf16.mxu1 %vm992_vm0, %v991_v3 }
 0x225   : > { %858 = vmatprep.subr.bf16.mxu1 %v991_v3 }
 0x22b   : > { %849 = vmatmul.mubr.msk.bf16.vlgmr.msra.gmra.mxu1 %vm243_vm1, %v353_v29 }
 0x22c   : > { %859 = vmatpush3.bf16.xpose.msra.mxu1 %v476_v32  ;;  %860 = vmatprep.mubr.msk.bf16.mxu1 %vm992_vm0, %v991_v3 }
 0x22d   : > { %870 = vmatprep.subr.bf16.mxu1 %v991_v3 }
 0x233   : > { %861 = vmatmul.mubr.msk.bf16.vlgmr.msra.gmra.mxu1 %vm243_vm1, %v469_v31 }
 0x234   : > { %871 = vmatpush3.bf16.xpose.msra.mxu1 %v586_v34  ;;  %872 = vmatprep.mubr.msk.bf16.mxu1 %vm992_vm0, %v991_v3 }
 0x23b   : > { %873 = vmatmul.mubr.msk.bf16.vlgmr.msra.gmra.mxu1 %vm243_vm1, %v579_v35 }
 0x2e3   : > { %v1115_v36 = vpop.f32.mrf.mxu1 }
 0x2e5   : > { %v844_v37 = vpop.f32.mrf.mxu1 }
 0x2e7   : > { %v346_v38 = vpop.f32.mrf.mxu1 }
 0x2e9   : > { %v845_v39 = vpop.f32.mrf.mxu1 }
 0x2eb   : > { %v399_v40 = vpop.f32.mrf.mxu1 }
 0x2ec   : > { %v400_v41 = vadd.f32 %v1083_v7, %v399_v40 }
 0x2ed   : > { %v850_v42 = vpop.f32.mrf.mxu1 }
 0x2ee   : > { %v405_v43 = vsel %vm243_vm1, %v400_v41, -inf }
 0x2ef   : > { %406 = vmax.xlane.f32.xlu1 %v405_v43  ;;  %v402_v44 = vpop.f32.mrf.mxu1 }
 0x2f1   : > { %v851_v45 = vpop.f32.mrf.mxu1 }
 0x2f3   : > { %v512_v46 = vpop.f32.mrf.mxu1 }
 0x2f4   : > { %v513_v47 = vadd.f32 %v1083_v7, %v512_v46 }
 0x2f5   : > { %v862_v48 = vpop.f32.mrf.mxu1 }
 0x2f6   : > { %v518_v49 = vsel %vm243_vm1, %v513_v47, -inf }
 0x2f7   : > { %519 = vmax.xlane.f32.xlu0 %v518_v49  ;;  %v515_v50 = vpop.f32.mrf.mxu1 }
 0x2f9   : > { %v863_v51 = vpop.f32.mrf.mxu1 }
 0x2fb   : > { %v622_v52 = vpop.f32.mrf.mxu1 }
 0x2fc   : > { %v623_v53 = vadd.f32 %v1083_v7, %v622_v52 }
 0x2fd   : > { %v874_v54 = vpop.f32.mrf.mxu1 }
 0x2fe   : > { %v628_v55 = vsel %vm243_vm1, %v623_v53, -inf }
 0x2ff   : > { %629 = vmax.xlane.f32.xlu1 %v628_v55  ;;  %v625_v56 = vpop.f32.mrf.mxu1 }
 0x301   : > { %v875_v57 = vpop.f32.mrf.mxu1 }
 0x378   : > { %v407_v58 = vpop.xlane.xlu1 %406 }
 0x379   : > { %v408_v59 = vsub.f32 %v400_v41, %v407_v58 }
 0x37b   : > { %v409_v60 = vmul.f32 1.442695, %v408_v59 }
 0x37d   : > { %939 = vpow2.f32 %v409_v60 }
 0x380   : > { %v520_v61 = vpop.xlane.xlu0 %519 }
 0x381   : > { %v521_v62 = vsub.f32 %v513_v47, %v520_v61 }
 0x383   : > { %v522_v63 = vmul.f32 1.442695, %v521_v62 }
 0x385   : > { %941 = vpow2.f32 %v522_v63 }
 0x388   : > { %v630_v6 = vpop.xlane.xlu1 %629 }
 0x389   : > { %v631_v7 = vsub.f32 %v623_v53, %v630_v6 }
 0x38a   : > { %v940_v0 = vpop.eup %939 }
 0x38b   : > { %v411_v1 = vsel %vm243_vm1, %v940_v0, 0.0  ;;  %v632_v8 = vmul.f32 1.442695, %v631_v7 }
 0x38c   : > { %412 = vadd.xlane.f32.xlu1 %v411_v1 }
 0x38d   : > { %943 = vpow2.f32 %v632_v8 }
 0x392   : > { %v942_v2 = vpop.eup %941 }
 0x393   : > { %v524_v4 = vsel %vm243_vm1, %v942_v2, 0.0 }
 0x394   : > { %525 = vadd.xlane.f32.xlu0 %v524_v4 }
 0x39a   : > { %v944_v9 = vpop.eup %943 }
 0x39b   : > { %v634_v10 = vsel %vm243_vm1, %v944_v9, 0.0 }
 0x39d   : > { %530 = vrot.lane.b32.xlu1 %v810_v5, %s994_s4 }
 0x3aa   : > { %420 = vrot.lane.b32.xlu0 %v810_v5, %s993_s3 }
 0x3c1   : > { %635 = vadd.xlane.f32.xlu1 %v634_v10 }
 0x3d2   : > { %640 = vrot.lane.b32.xlu1 %v810_v5, %s995_s5 }
 0x415   : > { %v413_v11 = vpop.xlane.xlu1 %412 }
 0x416   : > { %945 = vrcp.f32 %v413_v11 }
 0x419   : > { %v531_v17 = vpop.permute.xlu1 %530 }
 0x41a   : > { %v536_v19 = vsel %vm305_vm2, %v531_v17, 0 }
 0x41d   : > { %v526_v12 = vpop.xlane.xlu0 %525 }
 0x41e   : > { %947 = vrcp.f32 %v526_v12 }
 0x421   : > { %v421_v13 = vpop.permute.xlu0 %420 }
 0x422   : > { %v426_v14 = vsel %vm305_vm2, %v421_v13, 0 }
 0x423   : > { %v946_v15 = vpop.eup %945  ;;  %853 = vmatpush3.bf16.msra.mxu0 %v426_v14 }
 0x424   : > { %864 = vmatprep.subr.bf16.mxu0 %v991_v3  ;;  %v415_v16 = vmul.f32 %v946_v15, %v940_v0 }
 0x426   : > { %v416_v18 = vpack.c.bf16 %v415_v16, %v415_v16 }
 0x428   : > { %855 = vmatmul.mubr.msk.bf16.vlgmr.msra.gmra.mxu0 %vm243_vm1, %v416_v18 }
 0x429   : > { %865 = vmatpush3.bf16.msra.mxu0 %v536_v19  ;;  %866 = vmatprep.mubr.msk.bf16.mxu0 %vm992_vm0, %v991_v3 }
 0x42a   : > { %876 = vmatprep.subr.bf16.mxu0 %v991_v3 }
 0x42b   : > { %v948_v20 = vpop.eup %947 }
 0x42c   : > { %v528_v21 = vmul.f32 %v948_v20, %v942_v2 }
 0x42e   : > { %v529_v22 = vpack.c.bf16 %v528_v21, %v528_v21 }
 0x430   : > { %867 = vmatmul.mubr.msk.bf16.vlgmr.msra.gmra.mxu0 %vm243_vm1, %v529_v22 }
 0x431   : > { %878 = vmatprep.mubr.msk.bf16.mxu0 %vm992_vm0, %v991_v3 }
 0x44a   : > { %v636_v23 = vpop.xlane.xlu1 %635 }
 0x44b   : > { %949 = vrcp.f32 %v636_v23 }
 0x44e   : > { %v641_v24 = vpop.permute.xlu1 %640 }
 0x44f   : > { %v646_v25 = vsel %vm305_vm2, %v641_v24, 0 }
 0x450   : > { %877 = vmatpush3.bf16.msra.mxu0 %v646_v25 }
 0x458   : > { %v950_v26 = vpop.eup %949 }
 0x459   : > { %v638_v27 = vmul.f32 %v950_v26, %v944_v9 }
 0x45b   : > { %v639_v28 = vpack.c.bf16 %v638_v27, %v638_v27 }
 0x45d   : > { %879 = vmatmul.mubr.msk.bf16.vlgmr.msra.gmra.mxu0 %vm243_vm1, %v639_v28 }
 0x4e8   : > { %v462_v29 = vpop.f32.mrf.mxu0 }
 0x4e9   : > { %689 = vrot.lane.b32.xlu0 %v462_v29, %s996_s6 }
 0x4ea   : > { %v856_v30 = vpop.f32.mrf.mxu0 }
 0x4ec   : > { %v465_v31 = vpop.f32.mrf.mxu0 }
 0x4ee   : > { %v857_v32 = vpop.f32.mrf.mxu0 }
 0x4f0   : > { %v572_v33 = vpop.f32.mrf.mxu0 }
 0x4f1   : > { %693 = vrot.lane.b32.xlu1 %v572_v33, %s997_s7 }
 0x4f2   : > { %v868_v3 = vpop.f32.mrf.mxu0 }
 0x4f4   : > { %v575_v34 = vpop.f32.mrf.mxu0 }
 0x4f6   : > { %v869_v35 = vpop.f32.mrf.mxu0 }
 0x51d   : > { %v682_v37 = vpop.f32.mrf.mxu0 }
 0x51e   : > { %697 = vrot.lane.b32.xlu0 %v682_v37, %s998_s8 }
 0x51f   : > { %v880_v38 = vpop.f32.mrf.mxu0 }
 0x521   : > { %v685_v39 = vpop.f32.mrf.mxu0 }
 0x523   : > { %v881_v40 = vpop.f32.mrf.mxu0 }
 0x55b   : > { %v690_v41 = vpop.permute.xlu0 %689 }
 0x55c   : > { %v700_v43 = vsel %vm243_vm1, %v1115_v36, %v690_v41 }
 0x563   : > { %v694_v42 = vpop.permute.xlu1 %693 }
 0x564   : > { %v702_v44 = vsel %vm701_vm3, %v700_v43, %v694_v42 }
 0x590   : > { %v698_v45 = vpop.permute.xlu0 %697 }
 0x591   : > { %v704_v46 = vsel %vm703_vm4, %v702_v44, %v698_v45 }
 0x592   : > { %v705_v47 = vpack.c.bf16 %v704_v46, %v704_v46 }
 0x594   : > { %707 = vst.msk [vmem:[%s229_s18] sm:$0xf] %vm706_vm5, %v705_v47 }
 0x595 PF: > { %s12_s13 = sadd.s32 1, %s989_s13   ;;  %s1167_s9 = smov %s977_s10 }
 0x596   : > { %p9_p10 = scmp.ge.s32.totalorder %s12_s13, 4   ;;  %s1168_s10 = smov %s1049_s17 }
 0x597   : > { %s1169_s11 = smov %s985_s12  ;;  %s1170_s12 = smov %s1172_s14 }
 0x598   :  { %11 = sbr.rel (!%p9_p10) target bundleno = 3 (0x3), region = 109 }

</bundles_post_ra>
